<compile_context>
chip_gen: v6e
topology: v6e:2x2x1
jax: 0.10.0
libtpu: 0.0.40
codegen_flags: <defaults>
</compile_context>

<pallas_src>
import functools
import math

import jax
import jax.numpy as jnp
from jax import lax
from jax.experimental import pallas as pl
from jax.experimental.pallas import tpu as pltpu


# Contract the last axis of both operands: A @ B^T (PyTorch nn.Linear layout,
# no HBM-side weight transpose).
_DN_BT = (((1,), (1,)), ((), ()))


def _swiglu_resident_kernel(x_ref, w1_ref, w3_ref, w2_ref, o_ref):
    """Single hidden step: weights fully VMEM-resident, no accumulator scratch.

    x_ref  : (tm, dim)       token tile
    w1_ref : (hidden, dim)   full w1 (PyTorch layout)
    w3_ref : (hidden, dim)   full w3
    w2_ref : (dim, hidden)   full w2
    o_ref  : (tm, dim)       output tile
    """
    x = x_ref[...]
    gate = lax.dot_general(x, w1_ref[...], _DN_BT,
                           preferred_element_type=jnp.float32)
    up = lax.dot_general(x, w3_ref[...], _DN_BT,
                         preferred_element_type=jnp.float32)
    # SwiGLU nonlinearity in f32 (sigmoid hits the EUP slot).
    h = (gate * jax.nn.sigmoid(gate)) * up
    o_ref[...] = lax.dot_general(
        h.astype(x.dtype), w2_ref[...], _DN_BT,
        preferred_element_type=jnp.float32).astype(o_ref.dtype)


def _swiglu_tiled_kernel(x_ref, w1_ref, w3_ref, w2_ref, o_ref, acc_ref):
    """Hidden-streamed step: accumulate partial down-projections in f32 scratch.

    x_ref  : (tm, dim)   token tile
    w1_ref : (tn, dim)   hidden-row tile of w1
    w3_ref : (tn, dim)   hidden-row tile of w3
    w2_ref : (dim, tn)   hidden-col tile of w2
    o_ref  : (tm, dim)   output tile (resident across the hidden axis)
    acc_ref: (tm, dim)   f32 accumulator scratch
    """
    k = pl.program_id(1)

    @pl.when(k == 0)
    def _init():
        acc_ref[...] = jnp.zeros_like(acc_ref)

    x = x_ref[...]
    gate = lax.dot_general(x, w1_ref[...], _DN_BT,
                           preferred_element_type=jnp.float32)
    up = lax.dot_general(x, w3_ref[...], _DN_BT,
                         preferred_element_type=jnp.float32)
    h = (gate * jax.nn.sigmoid(gate)) * up
    acc_ref[...] += lax.dot_general(
        h.astype(x.dtype), w2_ref[...], _DN_BT,
        preferred_element_type=jnp.float32)

    @pl.when(k == pl.num_programs(1) - 1)
    def _finalize():
        o_ref[...] = acc_ref[...].astype(o_ref.dtype)


def _vmem_capacity_bytes() -> int:
    """Physical VMEM per TensorCore, with a conservative (v7x-safe) fallback."""
    try:
        info = pltpu.get_tpu_info()
        cap = getattr(info, "vmem_capacity_bytes", None)
        if cap:
            return int(cap)
    except Exception:
        pass
    return 64 * 1024 * 1024


@functools.partial(jax.jit, static_argnames=("tm", "tn", "dropout_p"))
def feed_forward_pallas(x, w1, w2, w3, *, tm=None, tn=None, dropout_p=0.0):
    """x: (..., dim); w1, w3: (hidden, dim); w2: (dim, hidden) — PyTorch layout.

    Compute dtype follows the weights' dtype (cast weights outside, once,
    rather than per call); accumulation is always f32.
    """
    assert dropout_p == 0.0, "TODO(synk): training-mode dropout not implemented"

    dim = x.shape[-1]
    hidden = w1.shape[0]
    assert w1.shape == (hidden, dim) and w3.shape == (hidden, dim)
    assert w2.shape == (dim, hidden)

    compute_dtype = w1.dtype
    assert w2.dtype == compute_dtype and w3.dtype == compute_dtype, \
        "all weights must share one dtype (cast them once, outside this call)"
    itemsize = jnp.dtype(compute_dtype).itemsize

    lead = x.shape[:-1]
    xt = x.reshape(-1, dim)
    T = xt.shape[0]
    assert T > 0
    if xt.dtype != compute_dtype:
        xt = xt.astype(compute_dtype)

    # --- generation-aware VMEM budget -----------------------------------------
    cap = _vmem_capacity_bytes()
    budget = int(cap * 0.60)          # working-set target (all double-buffered tiles)
    vmem_limit = int(cap * 0.75)      # Mosaic scoped-VMEM ceiling, leaves headroom

    # --- hidden tiling: resident if the weights fit, streamed otherwise -------
    weight_bytes = 3 * hidden * dim * itemsize
    if tn is None:
        if 2 * weight_bytes <= budget:          # 2x: Pallas double-buffers blocks
            tn = hidden                         # resident: fetched once, 1 hidden step
        else:
            tn = None
            # Largest 128-aligned divisor of hidden whose (double-buffered) weight
            # tiles fit; favors >=256-wide tiles (256-wide MXU on v6e/v7x).
            for c in range(min(hidden - hidden % 128, 4096), 127, -128):
                if hidden % c == 0 and 2 * 3 * c * dim * itemsize <= budget:
                    tn = c
                    break
            if tn is None:
                divs = [c for c in range(128, hidden, 128) if hidden % c == 0]
                tn = min(divs) if divs else hidden
    assert hidden % tn == 0, "tn must divide hidden"
    assert tn == hidden or tn % 128 == 0, "tn must be lane-aligned (x128)"
    n_hid_tiles = hidden // tn

    # --- token tiling (partial last block allowed; no jnp.pad round-trip) -----
    if tm is None:
        w_foot = 2 * 3 * tn * dim * itemsize            # weight tiles, double-buffered
        left = max(budget - w_foot, 0)

        def _tile_foot(tm_):
            io = 2 * 2 * tm_ * dim * itemsize            # x + out tiles, double-buffered
            acc = tm_ * dim * 4 if n_hid_tiles > 1 else 0  # f32 accumulator scratch
            tmp = 3 * tm_ * tn * 4                        # gate/up/h f32 temporaries
            return io + acc + tmp

        tm = 512
        while tm > 8 and _tile_foot(tm) > left:
            tm //= 2
        if n_hid_tiles == 1:
            # Megacore (v7x): keep >= 2 tiles on the "parallel" token axis when the
            # weights are resident (no weight-refetch penalty for extra tiles).
            while tm > 8 and pl.cdiv(T, tm) < 2:
                tm //= 2
    assert tm % 8 == 0, "tm must be a multiple of 8 (f32 sublane)"
    n_tok_tiles = pl.cdiv(T, tm)

    # --- cost estimate (advisory) ----------------------------------------------
    weight_passes = 1 if n_hid_tiles == 1 else n_tok_tiles
    cost = pl.CostEstimate(
        flops=6 * T * dim * hidden,                      # 3 matmuls x 2 flops/MAC
        transcendentals=T * hidden,                      # sigmoid in silu
        bytes_accessed=(2 * T * dim + 3 * dim * hidden * weight_passes) * itemsize,
    )

    compiler_params = pltpu.CompilerParams(
        dimension_semantics=("parallel",) if n_hid_tiles == 1
        else ("parallel", "arbitrary"),
        vmem_limit_bytes=vmem_limit,
    )

    if n_hid_tiles == 1:
        # Resident-weight path: constant weight block index -> single HBM fetch,
        # no accumulator scratch, direct o_ref write.
        grid_spec = pltpu.PrefetchScalarGridSpec(
            num_scalar_prefetch=0,
            grid=(n_tok_tiles,),
            in_specs=[
                pl.BlockSpec((tm, dim), lambda i: (i, 0)),       # x token tile
                pl.BlockSpec((hidden, dim), lambda i: (0, 0)),   # w1 (resident)
                pl.BlockSpec((hidden, dim), lambda i: (0, 0)),   # w3 (resident)
                pl.BlockSpec((dim, hidden), lambda i: (0, 0)),   # w2 (resident)
            ],
            out_specs=pl.BlockSpec((tm, dim), lambda i: (i, 0)),
            scratch_shapes=[],
        )
        kernel = _swiglu_resident_kernel
    else:
        # Streamed-hidden path: accumulate into f32 scratch across the hidden axis.
        grid_spec = pltpu.PrefetchScalarGridSpec(
            num_scalar_prefetch=0,
            grid=(n_tok_tiles, n_hid_tiles),
            in_specs=[
                pl.BlockSpec((tm, dim), lambda i, k: (i, 0)),    # x token tile
                pl.BlockSpec((tn, dim), lambda i, k: (k, 0)),    # w1 hidden-row tile
                pl.BlockSpec((tn, dim), lambda i, k: (k, 0)),    # w3 hidden-row tile
                pl.BlockSpec((dim, tn), lambda i, k: (0, k)),    # w2 hidden-col tile
            ],
            out_specs=pl.BlockSpec((tm, dim), lambda i, k: (i, 0)),
            scratch_shapes=[pltpu.VMEM((tm, dim), jnp.float32)],
        )
        kernel = _swiglu_tiled_kernel

    out = pl.pallas_call(
        kernel,
        out_shape=jax.ShapeDtypeStruct((T, dim), compute_dtype),
        grid_spec=grid_spec,
        compiler_params=compiler_params,
        cost_estimate=cost,
    )(xt, w1, w3, w2)

    return out.reshape(*lead, dim)


def feed_forward_ref(x, w1, w2, w3):
    """Pure-JAX reference mirroring the PyTorch forward (dropout p=0)."""
    gate = x @ w1.T
    up = x @ w3.T
    h = (gate * jax.nn.sigmoid(gate)) * up
    return h @ w2.T


if __name__ == "__main__":
    # Module config: dim=128, hidden_dim=None, multiple_of=128, dropout=0.0
    #   hidden_dim = 4*128 = 512 -> int(2*512/3) = 341 -> round up to 128 -> 384
    dim = 128
    multiple_of = 128
    hidden_dim = 4 * dim
    hidden_dim = int(2 * hidden_dim / 3)
    hidden_dim = multiple_of * ((hidden_dim + multiple_of - 1) // multiple_of)  # 384

    batch, seq = 2, 128  # T = 256 tokens

    key = jax.random.PRNGKey(0)
    kx, k1, k2, k3 = jax.random.split(key, 4)
    x = jax.random.normal(kx, (batch, seq, dim), dtype=jnp.float32)
    w1 = jax.random.uniform(k1, (hidden_dim, dim), jnp.float32,
                            minval=-1.0, maxval=1.0) / math.sqrt(dim)
    w2 = jax.random.uniform(k2, (dim, hidden_dim), jnp.float32,
                            minval=-1.0, maxval=1.0) / math.sqrt(hidden_dim)
    w3 = jax.random.uniform(k3, (hidden_dim, dim), jnp.float32,
                            minval=-1.0, maxval=1.0) / math.sqrt(dim)

    ref = feed_forward_ref(x, w1, w2, w3)

    # 1) f32, auto tiling: weights resident (tn=hidden), >=2 parallel token tiles,
    #    no accumulator scratch.
    out = jax.block_until_ready(feed_forward_pallas(x, w1, w2, w3))
    assert out.shape == x.shape, (out.shape, x.shape)
    assert jnp.allclose(out, ref, atol=3e-3, rtol=3e-3), \
        float(jnp.max(jnp.abs(out - ref)))

    # 2) f32, forced hidden-streaming path (tn=128 -> 3 reduction steps, f32 acc).
    out2 = jax.block_until_ready(feed_forward_pallas(x, w1, w2, w3, tm=128, tn=128))
    assert jnp.allclose(out2, ref, atol=3e-3, rtol=3e-3), \
        float(jnp.max(jnp.abs(out2 - ref)))

    # 3) bf16 weights/activations (cast ONCE, outside the call) + ragged token
    #    count (T=200 -> partial last token block, no jnp.pad round-trip).
    xr = x[:, :100, :]
    xb = xr.astype(jnp.bfloat16)
    w1b, w2b, w3b = (w.astype(jnp.bfloat16) for w in (w1, w2, w3))
    out3 = jax.block_until_ready(feed_forward_pallas(xb, w1b, w2b, w3b))
    ref3 = feed_forward_ref(xr, w1, w2, w3)
    assert out3.shape == xr.shape, (out3.shape, xr.shape)
    assert jnp.allclose(out3.astype(jnp.float32), ref3, atol=5e-2, rtol=5e-2), \
        float(jnp.max(jnp.abs(out3.astype(jnp.float32) - ref3)))

    print("KERNEL_OK")
</pallas_src>

<mosaic_0001>
module attributes {stable_mosaic.version = 11 : i64} {
  func.func @_swiglu_resident_kernel(%arg0: i32, %arg1: memref<128x128xf32, #tpu.memory_space<vmem>>, %arg2: memref<384x128xf32, #tpu.memory_space<vmem>>, %arg3: memref<384x128xf32, #tpu.memory_space<vmem>>, %arg4: memref<128x384xf32, #tpu.memory_space<vmem>>, %arg5: memref<128x128xf32, #tpu.memory_space<vmem>>) attributes {dimension_semantics = [#tpu.dimension_semantics<parallel>], iteration_bounds = array<i64: 2>, scalar_prefetch = 0 : i64, scratch_operands = 0 : i64, tpu.core_type = #tpu.core_type<tc>, window_params = [{transform_indices = @transform_0, window_bounds = array<i64: 128, 128>}, {pipeline_mode = #tpu.pipeline_mode<synchronous>, transform_indices = @transform_1, window_bounds = array<i64: 384, 128>}, {pipeline_mode = #tpu.pipeline_mode<synchronous>, transform_indices = @transform_2, window_bounds = array<i64: 384, 128>}, {pipeline_mode = #tpu.pipeline_mode<synchronous>, transform_indices = @transform_3, window_bounds = array<i64: 128, 384>}, {transform_indices = @transform_4, window_bounds = array<i64: 128, 128>}]} {
    %c0 = arith.constant 0 : index
    %c0_0 = arith.constant 0 : index
    %0 = vector.load %arg1[%c0, %c0_0] : memref<128x128xf32, #tpu.memory_space<vmem>>, vector<128x128xf32>
    %c0_1 = arith.constant 0 : index
    %c0_2 = arith.constant 0 : index
    %1 = vector.load %arg2[%c0_1, %c0_2] : memref<384x128xf32, #tpu.memory_space<vmem>>, vector<384x128xf32>
    %cst = arith.constant dense<0.000000e+00> : vector<128x384xf32>
    %2 = tpu.matmul %0, %1, %cst {dimension_numbers = #tpu.dot_dimension_numbers<[1], [1], [0], [0], [0, 0, 1, 0], [], []>} : vector<128x128xf32>, vector<384x128xf32>, vector<128x384xf32> -> vector<128x384xf32>
    %c0_3 = arith.constant 0 : index
    %c0_4 = arith.constant 0 : index
    %3 = vector.load %arg3[%c0_3, %c0_4] : memref<384x128xf32, #tpu.memory_space<vmem>>, vector<384x128xf32>
    %cst_5 = arith.constant dense<0.000000e+00> : vector<128x384xf32>
    %4 = tpu.matmul %0, %3, %cst_5 {dimension_numbers = #tpu.dot_dimension_numbers<[1], [1], [0], [0], [0, 0, 1, 0], [], []>} : vector<128x128xf32>, vector<384x128xf32>, vector<128x384xf32> -> vector<128x384xf32>
    %5 = arith.negf %2 : vector<128x384xf32>
    %6 = math.exp %5 : vector<128x384xf32>
    %cst_6 = arith.constant 1.000000e+00 : f32
    %7 = vector.broadcast %cst_6 : f32 to vector<128x384xf32>
    %8 = arith.addf %7, %6 : vector<128x384xf32>
    %9 = arith.divf %7, %8 : vector<128x384xf32>
    %10 = arith.mulf %2, %9 : vector<128x384xf32>
    %11 = arith.mulf %10, %4 : vector<128x384xf32>
    %c0_7 = arith.constant 0 : index
    %c0_8 = arith.constant 0 : index
    %12 = vector.load %arg4[%c0_7, %c0_8] : memref<128x384xf32, #tpu.memory_space<vmem>>, vector<128x384xf32>
    %cst_9 = arith.constant dense<0.000000e+00> : vector<128x128xf32>
    %13 = tpu.matmul %11, %12, %cst_9 {dimension_numbers = #tpu.dot_dimension_numbers<[1], [1], [0], [0], [0, 0, 1, 0], [], []>} : vector<128x384xf32>, vector<128x384xf32>, vector<128x128xf32> -> vector<128x128xf32>
    %c0_10 = arith.constant 0 : index
    %c0_11 = arith.constant 0 : index
    %14 = vector.load %arg5[%c0_10, %c0_11] : memref<128x128xf32, #tpu.memory_space<vmem>>, vector<128x128xf32>
    tpu.vector_store %arg5[%c0_10, %c0_11], %13 {strides = array<i32>} : memref<128x128xf32, #tpu.memory_space<vmem>>, vector<128x128xf32>,
    return
  }
  func.func @transform_0(%arg0: i32) -> (i32, i32) {
    %c0_i32 = arith.constant 0 : i32
    %c0_i32_0 = arith.constant 0 : i32
    return %arg0, %c0_i32 : i32, i32
  }
  func.func @transform_1(%arg0: i32) -> (i32, i32) {
    %c0_i32 = arith.constant 0 : i32
    %c0_i32_0 = arith.constant 0 : i32
    %c0_i32_1 = arith.constant 0 : i32
    return %c0_i32, %c0_i32_0 : i32, i32
  }
  func.func @transform_2(%arg0: i32) -> (i32, i32) {
    %c0_i32 = arith.constant 0 : i32
    %c0_i32_0 = arith.constant 0 : i32
    %c0_i32_1 = arith.constant 0 : i32
    return %c0_i32, %c0_i32_0 : i32, i32
  }
  func.func @transform_3(%arg0: i32) -> (i32, i32) {
    %c0_i32 = arith.constant 0 : i32
    %c0_i32_0 = arith.constant 0 : i32
    %c0_i32_1 = arith.constant 0 : i32
    return %c0_i32, %c0_i32_0 : i32, i32
  }
  func.func @transform_4(%arg0: i32) -> (i32, i32) {
    %c0_i32 = arith.constant 0 : i32
    %c0_i32_0 = arith.constant 0 : i32
    return %arg0, %c0_i32 : i32, i32
  }
}

</mosaic_0001>

<bundles_post_ra>
// kernel: feed_forward_pallas.1
= control target key start
LH: loop header
LB: loop body
LE: loop exit
PB: predicated region body
PF: predicated region fallthrough
CT: control target
= control target key end

     0   :  { %9 = vsyncpa [#allocation3], 0  ;;  %s3444_s0 = inlined_call_operand.hbm [shape: f32[256,128], index: 0, kind: input, shape index: {}]   ;;  %s3445_s1 = inlined_call_operand.hbm [shape: f32[384,128], index: 1, kind: input, shape index: {}]   ;;  %s3446_s2 = inlined_call_operand.hbm [shape: f32[384,128], index: 2, kind: input, shape index: {}]   ;;  %s3447_s3 = inlined_call_operand.hbm [shape: f32[128,384], index: 3, kind: input, shape index: {}]   ;;  %s3448_s4 = inlined_call_operand.hbm [shape: f32[256,128], index: 4, kind: output, shape index: {}]  }
   0x1   :  { %11 = vsyncpa [#allocation3 + $0x1], 0 }
   0x2   :  { %12 = vsyncpa [#allocation6], 0 }
   0x3   :  { %13 = vsyncpa [#allocation9], 0 }
   0x4   :  { %14 = vsyncpa [#allocation4], 0 }
   0x5   :  { %16 = vsyncpa [#allocation4 + $0x1], 0  ;;  %s2793_s15 = smov 0   ;;  %s2795_s16 = smov 0  }
   0x6   :  { %s2797_s17 = smov 0   ;;  %s2799_s18 = smov 0  }
   0x7 LB: > { %s2814_s19 = sadd.s32 4294967295, %s2755_s18   ;;  %s1840_s20 = sadd.s32 4294967294, %s2755_s18   ;;  %s2755_s18 = sphi %s2799_s18, %s3530_s18   ;;  %s2751_s17 = sphi %s2797_s17, %s3529_s17   ;;  %s2747_s16 = sphi %s2795_s16, %s3528_s16   ;;  %s2743_s15 = sphi %s2793_s15, %s3527_s15  }
   0x8   : > { %p42_p0 = scmp.ne.s32.totalorder %s2747_s16, %s2743_s15  ;;  %p3449_p1 = scmp.eq.s32.totalorder %s2814_s19, 0 }
   0x9   : > { %p129_p2 = scmp.eq.s32.totalorder %s2814_s19, 1  ;;  %p135_p3 = scmp.eq.s32.totalorder %s1840_s20, 1 }
   0xa   : > { %p2823_p4 = por %p3449_p1, %p42_p0  ;;  %p1841_p5 = scmp.ge.s32.totalorder %s2755_s18, 1 }
   0xb   : > { %p2828_p6 = por %p135_p3, %p42_p0  ;;  %p142_p7 = scmp.lt.s32.totalorder %s2755_s18, 3 }
   0xc   : > { %s3472_s21 = scalar_select %p2823_p4, 1, 0 }
   0xd   : > { %s3473_s22 = scalar_select %p2828_p6, 1, 0 }
   0xe   : > { %p2833_p8 = pnand %p1841_p5, %p142_p7  ;;  %s2757_s24 = smov [#allocation5]  }
   0xf   : > { %s154_s25 = sshll.u32 %s2757_s24, 4  ;;  %s2758_s27 = smov [#allocation7]   ;;  %s155_s25 = int_to_ptr.vmem [resolvable:$true] %s154_s25 }
  0x10   : > { %s3474_s23 = scalar_select %p2833_p8, 1, 0 }
  0x11   : > { %p2318_p9 = pneg %p2833_p8  ;;  %s167_s28 = sshll.u32 %s2758_s27, 4  ;;  %s168_s28 = int_to_ptr.vmem [resolvable:$true] %s167_s28 }
  0x12   : > { %s2759_s29 = smov [#allocation8]   ;;  %s2588_s5 = scalar_lea.vmem %s155_s25, 6144 }
  0x13   : > { %p2842_p11 = pnand %p2318_p9, %p3449_p1  ;;  %s180_s30 = sshll.u32 %s2759_s29, 4  ;;  %s181_s30 = int_to_ptr.vmem [resolvable:$true] %s180_s30 }
  0x14   : > { %p2589_p13 = scmp.ne.s32.totalorder %s155_s25, %s2588_s5  ;;  %p2596_p5 = scmp.lt.s32.totalorder %s155_s25, %s155_s25 }
  0x15   : > { %p2579_p12 = pneg %p2842_p11  ;;  %p2597_p7 = scmp.lt.s32.totalorder %s2588_s5, %s2588_s5 }
  0x17   : > { %p2591_p0 = pnand %p2589_p13, %p2579_p12  ;;  %p2598_p9 = por %p2597_p7, %p2596_p5 }
  0x19   : > { %p2592_p3 = pneg %p2591_p0 }
  0x1b   : > { %p2599_p10 = pnand %p2598_p9, %p2592_p3 }
  0x1d   : > { %2602 = shalt.err (!%p2599_p10)
}
  0x1e   : > { %s2760_s6 = smov 128   ;;  %s2761_s7 = smov 8  }
  0x1f   : > { %2321 = dma.hbm_to_vmem [thread:$0]  (!%p2842_p11), %s3445_s1, 6144, %s155_s25, [#allocation6], %s2760_s6, %s2760_s6, %s2761_s7  }
  0x20   : > { %s2614_s10 = scalar_lea.vmem %s168_s28, 6144  ;;  %p2622_p3 = scmp.lt.s32.totalorder %s168_s28, %s168_s28 }
  0x21   : > { %p2615_p13 = scmp.ne.s32.totalorder %s168_s28, %s2614_s10  ;;  %p2623_p10 = scmp.lt.s32.totalorder %s2614_s10, %s2614_s10 }
  0x23   : > { %p2617_p0 = pnand %p2615_p13, %p2579_p12  ;;  %p2624_p7 = por %p2623_p10, %p2622_p3 }
  0x25   : > { %p2618_p5 = pneg %p2617_p0 }
  0x27   : > { %p2625_p9 = pnand %p2624_p7, %p2618_p5 }
  0x29   : > { %2628 = shalt.err (!%p2625_p9)
}
  0x2a   : > { %2324 = dma.hbm_to_vmem [thread:$0]  (!%p2842_p11), %s3446_s2, 6144, %s168_s28, [#allocation6], %s2760_s6, %s2760_s6, %s2761_s7  }
  0x2b   : > { %s2640_s13 = scalar_lea.vmem %s181_s30, 6144  ;;  %p2648_p3 = scmp.lt.s32.totalorder %s181_s30, %s181_s30 }
  0x2c   : > { %p2641_p1 = scmp.ne.s32.totalorder %s181_s30, %s2640_s13  ;;  %p2649_p5 = scmp.lt.s32.totalorder %s2640_s13, %s2640_s13 }
  0x2e   : > { %p2643_p13 = pnand %p2641_p1, %p2579_p12  ;;  %p2650_p10 = por %p2649_p5, %p2648_p3 }
  0x30   : > { %p2644_p0 = pneg %p2643_p13 }
  0x32   : > { %p2651_p7 = pnand %p2650_p10, %p2644_p0 }
  0x34   : > { %2654 = shalt.err (!%p2651_p7)
}
  0x35   : > { %s2762_s14 = smov 384   ;;  %s2763_s20 = smov 24  }
  0x36   : > { %2327 = dma.hbm_to_vmem [thread:$0]  (!%p2842_p11), %s3447_s3, 6144, %s181_s30, [#allocation9], %s2762_s14, %s2762_s14, %s2763_s20  }
  0x37   : > { %s2879_s27 = sadd.s32 1, %s2755_s18   ;;  %s29_s29 = sadd.s32 1, %s2751_s17 }
  0x38   : > { %s26_s28 = ssub.s32 %s2755_s18, %s2879_s27  ;;  %p36_p12 = scmp.ne.s32.totalorder %s2751_s17, %s2747_s16 }
  0x39   : > { %p27_p1 = scmp.eq.s32.totalorder %s26_s28, 0  ;;  %p37_p9 = scmp.eq.s32.totalorder %s2755_s18, 0 }
  0x3a   : > { %p2339_p13 = scmp.lt.s32.totalorder %s2755_s18, 2  ;;  %p2893_p3 = por %p129_p2, %p36_p12 }
  0x3b   : > { %s2889_s5 = scalar_select %p27_p1, %s2751_s17, %s29_s29  }
  0x3c   : > { %p38_p0 = por %p37_p9, %p36_p12  ;;  %s194_s26 = sand.u32 1, %s2751_s17  }
  0x3d   : > { %s3476_s8 = scalar_select %p2893_p3, 1, 0 }
  0x3e   : > { %s1908_s9 = sshll.u32 %s2755_s18, 11  ;;  %s1846_s30 = sshll.u32 %s194_s26, 7 }
  0x3f   : > { %s2902_s12 = scalar_lea.hbm %s3444_s0, %s1908_s9  ;;  %s198_s13 = scalar_lea.vmem [#allocation2], %s1846_s30 }
  0x40   : > { %s205_s14 = sshll.u32 %s198_s13, 4  ;;  %p2904_p11 = pnand %p2339_p13, %p38_p0  ;;  %s2908_s14 = int_to_ptr.vmem [resolvable:$true] %s205_s14 }
  0x41   : > { %s2910_s24 = scalar_lea.sflag [#allocation3], %s194_s26  ;;  %s2655_s25 = scalar_lea.hbm %s2902_s12, 2048 }
  0x42   : > { %p2656_p2 = scmp.ne.s32.totalorder %s2902_s12, %s2655_s25  ;;  %p2657_p5 = pneg %p2904_p11 }
  0x43   : > { %s2660_s9 = scalar_lea.hbm %s3444_s0, 4096  ;;  %p2661_p1 = scmp.lt.s32.totalorder %s2902_s12, %s3444_s0 }
  0x44   : > { %p2658_p10 = pnand %p2657_p5, %p2656_p2  ;;  %p2662_p12 = scmp.lt.s32.totalorder %s2660_s9, %s2655_s25 }
  0x46   : > { %p2659_p7 = pneg %p2658_p10  ;;  %p2663_p9 = por %p2662_p12, %p2661_p1 }
  0x48   : > { %p2664_p13 = pnand %p2663_p9, %p2659_p7 }
  0x4a   : > { %2667 = shalt.err (!%p2664_p13)
}
  0x4b   : > { %s2668_s26 = scalar_lea.vmem %s2908_s14, 2048  ;;  %s2764_s11 = smov [#allocation2]  }
  0x4c   : > { %p2669_p0 = scmp.ne.s32.totalorder %s2908_s14, %s2668_s26  ;;  %s2673_s13 = sshll.u32 %s2764_s11, 4  ;;  %s2674_s13 = int_to_ptr.vmem [resolvable:$false] %s2673_s13 }
  0x4d   : > { %s2675_s28 = scalar_lea.vmem %s2674_s13, 4096  ;;  %p2676_p10 = scmp.lt.s32.totalorder %s2908_s14, %s2674_s13 }
  0x4e   : > { %p2671_p6 = pnand %p2669_p0, %p2657_p5  ;;  %p2677_p3 = scmp.lt.s32.totalorder %s2675_s28, %s2668_s26 }
  0x50   : > { %p2672_p2 = pneg %p2671_p6  ;;  %p2678_p4 = por %p2677_p3, %p2676_p10 }
  0x52   : > { %p2679_p8 = pnand %p2678_p4, %p2672_p2 }
  0x54   : > { %2682 = shalt.err (!%p2679_p8)
}
  0x55   : > { %2331 = dma.hbm_to_vmem [thread:$0]  (!%p2904_p11), %s2902_s12, 2048, %s2908_s14, %s2910_s24, %s2760_s6, %s2760_s6, %s2761_s7  }
  0x56   : > { %p3478_p6 = scmp.ne.s32.totalorder %s3474_s23, 0 }
  0x58   : > { %217 = sbr.rel (%p3478_p6) target bundleno = 701 (0x2bd), region = 36 }
  0x5d   : > { %s2937_s25 = sand.u32 1, %s2747_s16   ;;  %p3479_p4 = scmp.ne.s32.totalorder %s3472_s21, 0 }
  0x5e   : > { %s1850_s29 = sshll.u32 %s2937_s25, 7  ;;  %s220_s9 = scalar_lea.sflag [#allocation3], %s2937_s25 }
  0x5f   : > { %s2943_s20 = scalar_lea.vmem [#allocation2], %s1850_s29 }
  0x60   : > { %2726 = dma.done.wait (%p3479_p4), %s220_s9, 2048  }
  0x61   : > { %2728 = vsyncadd (%p3479_p4), %s220_s9, 4294965248  ;;  %p3480_p8 = scmp.eq.s32.totalorder %s2814_s19, 0 }
  0x63   : > { %2730 = dma.done.wait (%p3480_p8), [#allocation6], 12288   ;;  %p3481_p3 = pmov %p3480_p8 }
  0x65   : > { %2732 = vsyncadd (%p3481_p3), [#allocation6], 4294955008  ;;  %p3482_p11 = pmov %p3481_p3 }
  0x66   : > { %p3483_p5 = pmov %p3481_p3 }
  0x67   : > { %2734 = dma.done.wait (%p3482_p11), [#allocation9], 6144  }
  0x68   : > { %2736 = vsyncadd (%p3483_p5), [#allocation9], 4294961152  ;;  %v309_v0 = vld [vmem:[#allocation5 + $0xf8] sm:$0xff]  ;;  %v308_v3 = vld [vmem:[#allocation5 + $0xf0] sm:$0xff]  ;;  %s3376_s21 = scalar_lea.vmem [#allocation10], %s1850_s29  ;;  %s1909_s23 = sshll.u32 %s2814_s19, 11 }
  0x69   : > { %v325_v1 = vld [vmem:[#allocation5 + $0x178] sm:$0xff]  ;;  %1910 = vmatprep.subr.mxu0 %v309_v0  ;;  %v324_v4 = vld [vmem:[#allocation5 + $0x170] sm:$0xff]  ;;  %v307_v6 = vld [vmem:[#allocation5 + $0xe8] sm:$0xff]  ;;  %s1738_s6 = sshll.u32 %s3376_s21, 4  ;;  %s3398_s14 = scalar_lea.hbm %s3448_s4, %s1909_s23  ;;  %s3400_s6 = int_to_ptr.vmem [resolvable:$true] %s1738_s6 }
  0x6a   : > { %v293_v2 = vld [vmem:[#allocation5 + $0x78] sm:$0xff]  ;;  %2134 = vmatprep.subr.mxu1 %v325_v1  ;;  %v292_v5 = vld [vmem:[#allocation5 + $0x70] sm:$0xff]  ;;  %v323_v7 = vld [vmem:[#allocation5 + $0x168] sm:$0xff]  ;;  %s1725_s24 = scalar_lea.sflag [#allocation4], %s2937_s25  ;;  %s2683_s30 = scalar_lea.vmem %s3400_s6, 2048 }
  0x6b   : > { %1911 = vmatpush3.xpose.msra.mxu0 %v293_v2  ;;  %2135 = vmatpush3.xpose.msra.mxu1 %v325_v1  ;;  %v291_v8 = vld [vmem:[#allocation5 + $0x68] sm:$0xff]  ;;  %v306_v9 = vld [vmem:[#allocation5 + $0xe0] sm:$0xff]  ;;  %v305_v12 = vld [vmem:[#allocation5 + $0xd8] sm:$0xff]  ;;  %p2684_p7 = scmp.ne.s32.totalorder %s3400_s6, %s2683_s30  ;;  %p3524_p1 = scmp.ne.s32.totalorder %s3476_s8, 0 }
  0x6c   : > { %1912 = vmatprep.subr.mxu0 %v308_v3  ;;  %2136 = vmatprep.subr.mxu1 %v324_v4  ;;  %v322_v10 = vld [vmem:[#allocation5 + $0x160] sm:$0xff]  ;;  %v321_v13 = vld [vmem:[#allocation5 + $0x158] sm:$0xff]  ;;  %v304_v15 = vld [vmem:[#allocation5 + $0xd0] sm:$0xff]  ;;  %s2765_s19 = smov [#allocation10]  }
  0x6d   : > { %v290_v11 = vld [vmem:[#allocation5 + $0x60] sm:$0xff]  ;;  %v289_v14 = vld [vmem:[#allocation5 + $0x58] sm:$0xff]  ;;  %v320_v16 = vld [vmem:[#allocation5 + $0x150] sm:$0xff]  ;;  %p2685_p12 = pnand %p2684_p7, %p3524_p1  ;;  %s2687_s10 = sshll.u32 %s2765_s19, 4  ;;  %s2688_s10 = int_to_ptr.vmem [resolvable:$false] %s2687_s10 }
  0x6e   : > { %v2958_v17 = vld [vmem:[%s2943_s20] sm:$0xff]  ;;  %v288_v18 = vld [vmem:[#allocation5 + $0x50] sm:$0xff]  ;;  %v303_v19 = vld [vmem:[#allocation5 + $0xc8] sm:$0xff]  ;;  %s2689_s26 = scalar_lea.vmem %s2688_s10, 4096  ;;  %p2690_p13 = scmp.lt.s32.totalorder %s3400_s6, %s2688_s10 }
  0x6f   : > { %1913 = vmatpush3.xpose.msra.mxu0 %v292_v5  ;;  %2137 = vmatpush3.xpose.msra.mxu1 %v324_v4  ;;  %v319_v20 = vld [vmem:[#allocation5 + $0x148] sm:$0xff]  ;;  %v302_v22 = vld [vmem:[#allocation5 + $0xc0] sm:$0xff]  ;;  %v301_v25 = vld [vmem:[#allocation5 + $0xb8] sm:$0xff]  ;;  %p2686_p9 = pneg %p2685_p12  ;;  %p2691_p0 = scmp.lt.s32.totalorder %s2689_s26, %s2683_s30 }
  0x70   : > { %1914 = vmatprep.subr.mxu0 %v307_v6  ;;  %2138 = vmatprep.subr.mxu1 %v323_v7  ;;  %v287_v21 = vld [vmem:[#allocation5 + $0x48] sm:$0xff]  ;;  %v318_v23 = vld [vmem:[#allocation5 + $0x140] sm:$0xff]  ;;  %v317_v26 = vld [vmem:[#allocation5 + $0x138] sm:$0xff] }
  0x71   : > { %1942 = vmatprep.mubr.f32.mxu0 %v2958_v17  ;;  %2166 = vmatprep.mubr.f32.mxu1 %v2958_v17  ;;  %v286_v24 = vld [vmem:[#allocation5 + $0x40] sm:$0xff]  ;;  %v285_v27 = vld [vmem:[#allocation5 + $0x38] sm:$0xff]  ;;  %v300_v28 = vld [vmem:[#allocation5 + $0xb0] sm:$0xff]  ;;  %p2692_p2 = por %p2691_p0, %p2690_p13 }
  0x72   : > { %v316_v29 = vld [vmem:[#allocation5 + $0x130] sm:$0xff]  ;;  %v299_v31 = vld [vmem:[#allocation5 + $0xa8] sm:$0xff]  ;;  %v298_v34 = vld [vmem:[#allocation5 + $0xa0] sm:$0xff] }
  0x73   : > { %1915 = vmatpush3.xpose.msra.mxu0 %v291_v8  ;;  %2139 = vmatpush3.xpose.msra.mxu1 %v323_v7  ;;  %v284_v30 = vld [vmem:[#allocation5 + $0x30] sm:$0xff]  ;;  %v315_v32 = vld [vmem:[#allocation5 + $0x128] sm:$0xff]  ;;  %v314_v35 = vld [vmem:[#allocation5 + $0x120] sm:$0xff]  ;;  %p2693_p10 = pnand %p2692_p2, %p2686_p9 }
  0x74   : > { %1916 = vmatprep.subr.mxu0 %v306_v9  ;;  %2140 = vmatprep.subr.mxu1 %v322_v10  ;;  %v283_v33 = vld [vmem:[#allocation5 + $0x28] sm:$0xff]  ;;  %v282_v36 = vld [vmem:[#allocation5 + $0x20] sm:$0xff]  ;;  %v297_v37 = vld [vmem:[#allocation5 + $0x98] sm:$0xff] }
  0x75   : > { %v313_v38 = vld [vmem:[#allocation5 + $0x118] sm:$0xff]  ;;  %v296_v40 = vld [vmem:[#allocation5 + $0x90] sm:$0xff]  ;;  %v295_v43 = vld [vmem:[#allocation5 + $0x88] sm:$0xff] }
  0x76   : > { %v281_v39 = vld [vmem:[#allocation5 + $0x18] sm:$0xff]  ;;  %v312_v41 = vld [vmem:[#allocation5 + $0x110] sm:$0xff]  ;;  %v311_v44 = vld [vmem:[#allocation5 + $0x108] sm:$0xff] }
  0x77   : > { %1917 = vmatpush3.xpose.msra.mxu0 %v290_v11  ;;  %2141 = vmatpush3.xpose.msra.mxu1 %v322_v10  ;;  %v280_v42 = vld [vmem:[#allocation5 + $0x10] sm:$0xff]  ;;  %v279_v45 = vld [vmem:[#allocation5 + $0x8] sm:$0xff]  ;;  %v294_v46 = vld [vmem:[#allocation5 + $0x80] sm:$0xff] }
  0x78   : > { %1918 = vmatprep.subr.mxu0 %v305_v12  ;;  %2142 = vmatprep.subr.mxu1 %v321_v13  ;;  %v310_v47 = vld [vmem:[#allocation5 + $0x100] sm:$0xff]  ;;  %v663_v49 = vld [vmem:[#allocation7 + $0xf8] sm:$0xff]  ;;  %v2963_v51 = vld [vmem:[%s2943_s20 + $0x8] sm:$0xff] }
  0x79   : > { %v278_v48 = vld [vmem:[#allocation5] sm:$0xff]  ;;  %v679_v50 = vld [vmem:[#allocation7 + $0x178] sm:$0xff]  ;;  %v662_v53 = vld [vmem:[#allocation7 + $0xf0] sm:$0xff] }
  0x7a   : > { %v647_v52 = vld [vmem:[#allocation7 + $0x78] sm:$0xff]  ;;  %v678_v54 = vld [vmem:[#allocation7 + $0x170] sm:$0xff]  ;;  %v661_v57 = vld [vmem:[#allocation7 + $0xe8] sm:$0xff] }
  0x7b   : > { %1919 = vmatpush3.xpose.msra.mxu0 %v289_v14  ;;  %2143 = vmatpush3.xpose.msra.mxu1 %v321_v13  ;;  %v646_v55 = vld [vmem:[#allocation7 + $0x70] sm:$0xff]  ;;  %v2972_v58 = vld [vmem:[%s2943_s20 + $0x18] sm:$0xff]  ;;  %v677_v59 = vld [vmem:[#allocation7 + $0x168] sm:$0xff] }
  0x7c   : > { %1920 = vmatprep.subr.mxu0 %v304_v15  ;;  %2144 = vmatprep.subr.mxu1 %v320_v16  ;;  %v2969_v56 = vld [vmem:[%s2943_s20 + $0x10] sm:$0xff]  ;;  %v645_v60 = vld [vmem:[#allocation7 + $0x68] sm:$0xff]  ;;  %v2979_v61 = vld [vmem:[%s2943_s20 + $0x20] sm:$0xff] }
  0x7d   : > { %v660_v62 = vld [vmem:[#allocation7 + $0xe0] sm:$0xff]  ;;  %v2982_v63 = vld [vmem:[%s2943_s20 + $0x28] sm:$0xff]  ;;  %v2989_v2 = vld [vmem:[%s2943_s20 + $0x30] sm:$0xff] }
  0x7e   : > { %v676_v0 = vld [vmem:[#allocation7 + $0x160] sm:$0xff]  ;;  %v659_v3 = vld [vmem:[#allocation7 + $0xd8] sm:$0xff]  ;;  %v658_v8 = vld [vmem:[#allocation7 + $0xd0] sm:$0xff] }
  0x7f   : > { %1921 = vmatpush3.xpose.msra.mxu0 %v288_v18  ;;  %2145 = vmatpush3.xpose.msra.mxu1 %v320_v16  ;;  %v644_v1 = vld [vmem:[#allocation7 + $0x60] sm:$0xff]  ;;  %v2992_v4 = vld [vmem:[%s2943_s20 + $0x38] sm:$0xff]  ;;  %v3002_v9 = vld [vmem:[%s2943_s20 + $0x48] sm:$0xff] }
  0x80   : > { %1922 = vmatprep.subr.mxu0 %v303_v19  ;;  %2146 = vmatprep.subr.mxu1 %v319_v20  ;;  %v675_v5 = vld [vmem:[#allocation7 + $0x158] sm:$0xff]  ;;  %v2999_v7 = vld [vmem:[%s2943_s20 + $0x40] sm:$0xff]  ;;  %v674_v10 = vld [vmem:[#allocation7 + $0x150] sm:$0xff] }
  0x81   : > { %v643_v6 = vld [vmem:[#allocation7 + $0x58] sm:$0xff]  ;;  %v642_v11 = vld [vmem:[#allocation7 + $0x50] sm:$0xff]  ;;  %v657_v13 = vld [vmem:[#allocation7 + $0xc8] sm:$0xff] }
  0x82   : > { %v3009_v12 = vld [vmem:[%s2943_s20 + $0x50] sm:$0xff]  ;;  %v3012_v14 = vld [vmem:[%s2943_s20 + $0x58] sm:$0xff]  ;;  %v673_v15 = vld [vmem:[#allocation7 + $0x148] sm:$0xff] }
  0x83   : > { %1923 = vmatpush3.xpose.msra.mxu0 %v287_v21  ;;  %2147 = vmatpush3.xpose.msra.mxu1 %v319_v20  ;;  %v3018_v16 = vld [vmem:[%s2943_s20 + $0x68] sm:$0xff]  ;;  %v3022_v19 = vld [vmem:[%s2943_s20 + $0x60] sm:$0xff] }
  0x84   : > { %1924 = vmatprep.subr.mxu0 %v302_v22  ;;  %2148 = vmatprep.subr.mxu1 %v318_v23  ;;  %v641_v18 = vld [vmem:[#allocation7 + $0x48] sm:$0xff]  ;;  %v656_v20 = vld [vmem:[#allocation7 + $0xc0] sm:$0xff]  ;;  %v3028_v22 = vld [vmem:[%s2943_s20 + $0x70] sm:$0xff] }
  0x85   : > { %v672_v21 = vld [vmem:[#allocation7 + $0x140] sm:$0xff] }
  0x87   : > { %1925 = vmatpush3.xpose.msra.mxu0 %v286_v24  ;;  %2149 = vmatpush3.xpose.msra.mxu1 %v318_v23  ;;  %v3031_v23 = vld [vmem:[%s2943_s20 + $0x78] sm:$0xff]  ;;  %v640_v24 = vld [vmem:[#allocation7 + $0x40] sm:$0xff] }
  0x88   : > { %1926 = vmatprep.subr.mxu0 %v301_v25  ;;  %2150 = vmatprep.subr.mxu1 %v317_v26  ;;  %v655_v25 = vld [vmem:[#allocation7 + $0xb8] sm:$0xff] }
  0x8b   : > { %1927 = vmatpush3.xpose.msra.mxu0 %v285_v27  ;;  %2151 = vmatpush3.xpose.msra.mxu1 %v317_v26  ;;  %v671_v26 = vld [vmem:[#allocation7 + $0x138] sm:$0xff] }
  0x8c   : > { %1928 = vmatprep.subr.mxu0 %v300_v28  ;;  %2152 = vmatprep.subr.mxu1 %v316_v29  ;;  %v639_v27 = vld [vmem:[#allocation7 + $0x38] sm:$0xff]  ;;  %v654_v28 = vld [vmem:[#allocation7 + $0xb0] sm:$0xff] }
  0x8f   : > { %1929 = vmatpush3.xpose.msra.mxu0 %v284_v30  ;;  %2153 = vmatpush3.xpose.msra.mxu1 %v316_v29  ;;  %v670_v29 = vld [vmem:[#allocation7 + $0x130] sm:$0xff] }
  0x90   : > { %1930 = vmatprep.subr.mxu0 %v299_v31  ;;  %2154 = vmatprep.subr.mxu1 %v315_v32  ;;  %v638_v30 = vld [vmem:[#allocation7 + $0x30] sm:$0xff]  ;;  %v653_v31 = vld [vmem:[#allocation7 + $0xa8] sm:$0xff] }
  0x93   : > { %1931 = vmatpush3.xpose.msra.mxu0 %v283_v33  ;;  %2155 = vmatpush3.xpose.msra.mxu1 %v315_v32  ;;  %v669_v32 = vld [vmem:[#allocation7 + $0x128] sm:$0xff] }
  0x94   : > { %1932 = vmatprep.subr.mxu0 %v298_v34  ;;  %2156 = vmatprep.subr.mxu1 %v314_v35  ;;  %v637_v33 = vld [vmem:[#allocation7 + $0x28] sm:$0xff]  ;;  %v652_v34 = vld [vmem:[#allocation7 + $0xa0] sm:$0xff] }
  0x97   : > { %1933 = vmatpush3.xpose.msra.mxu0 %v282_v36  ;;  %2157 = vmatpush3.xpose.msra.mxu1 %v314_v35  ;;  %v668_v35 = vld [vmem:[#allocation7 + $0x120] sm:$0xff] }
  0x98   : > { %1934 = vmatprep.subr.mxu0 %v297_v37  ;;  %2158 = vmatprep.subr.mxu1 %v313_v38  ;;  %v636_v36 = vld [vmem:[#allocation7 + $0x20] sm:$0xff]  ;;  %v651_v37 = vld [vmem:[#allocation7 + $0x98] sm:$0xff] }
  0x9b   : > { %1935 = vmatpush3.xpose.msra.mxu0 %v281_v39  ;;  %2159 = vmatpush3.xpose.msra.mxu1 %v313_v38  ;;  %v667_v38 = vld [vmem:[#allocation7 + $0x118] sm:$0xff] }
  0x9c   : > { %1936 = vmatprep.subr.mxu0 %v296_v40  ;;  %2160 = vmatprep.subr.mxu1 %v312_v41  ;;  %v635_v39 = vld [vmem:[#allocation7 + $0x18] sm:$0xff]  ;;  %v650_v40 = vld [vmem:[#allocation7 + $0x90] sm:$0xff] }
  0x9f   : > { %1937 = vmatpush3.xpose.msra.mxu0 %v280_v42  ;;  %2161 = vmatpush3.xpose.msra.mxu1 %v312_v41  ;;  %v666_v41 = vld [vmem:[#allocation7 + $0x110] sm:$0xff] }
  0xa0   : > { %1938 = vmatprep.subr.mxu0 %v295_v43  ;;  %2162 = vmatprep.subr.mxu1 %v311_v44  ;;  %v634_v42 = vld [vmem:[#allocation7 + $0x10] sm:$0xff]  ;;  %v649_v43 = vld [vmem:[#allocation7 + $0x88] sm:$0xff] }
  0xa3   : > { %1939 = vmatpush3.xpose.msra.mxu0 %v279_v45  ;;  %2163 = vmatpush3.xpose.msra.mxu1 %v311_v44  ;;  %v665_v44 = vld [vmem:[#allocation7 + $0x108] sm:$0xff] }
  0xa4   : > { %1940 = vmatprep.subr.mxu0 %v294_v46  ;;  %2164 = vmatprep.subr.mxu1 %v310_v47  ;;  %v633_v45 = vld [vmem:[#allocation7 + $0x8] sm:$0xff]  ;;  %v648_v46 = vld [vmem:[#allocation7 + $0x80] sm:$0xff] }
  0xa7   : > { %1941 = vmatpush3.xpose.msra.mxu0 %v278_v48  ;;  %2165 = vmatpush3.xpose.msra.mxu1 %v310_v47  ;;  %v664_v47 = vld [vmem:[#allocation7 + $0x100] sm:$0xff] }
  0xa8   : > { %2006 = vmatprep.subr.mxu0 %v663_v49  ;;  %2190 = vmatprep.subr.mxu1 %v679_v50  ;;  %v632_v48 = vld [vmem:[#allocation7] sm:$0xff]  ;;  %v1416_v49 = vld [vmem:[#allocation8 + $0x170] sm:$0xff] }
  0xaa   : > { %1943 = vmatmul.mubr.f32.vlgmr.msra.gmra.mxu0 %v2958_v17  ;;  %2167 = vmatmul.mubr.f32.vlgmr.msra.gmra.mxu1 %v2963_v51 }
  0xab   : > { %2007 = vmatpush3.xpose.msra.mxu0 %v647_v52  ;;  %2191 = vmatpush3.xpose.msra.mxu1 %v679_v50  ;;  %v1417_v50 = vld [vmem:[#allocation8 + $0x178] sm:$0xff]  ;;  %v1415_v52 = vld [vmem:[#allocation8 + $0x168] sm:$0xff] }
  0xac   : > { %1944 = vmatprep.mubr.f32.mxu0 %v2963_v51  ;;  %2008 = vmatprep.subr.mxu0 %v662_v53  ;;  %v1412_v53 = vld [vmem:[#allocation8 + $0x150] sm:$0xff] }
  0xad   : > { %2192 = vmatprep.subr.mxu1 %v678_v54  ;;  %2169 = vmatprep.mubr.f32.mxu1 %v2969_v56 }
  0xae   : > { %1945 = vmatmul.mubr.f32.gmra.mxu0 %v2963_v51  ;;  %2170 = vmatmul.mubr.f32.gmra.mxu1 %v2972_v58 }
  0xaf   : > { %2009 = vmatpush3.xpose.msra.mxu0 %v646_v55  ;;  %2193 = vmatpush3.xpose.msra.mxu1 %v678_v54  ;;  %v1410_v54 = vld [vmem:[#allocation8 + $0x140] sm:$0xff]  ;;  %v1411_v55 = vld [vmem:[#allocation8 + $0x148] sm:$0xff] }
  0xb0   : > { %1946 = vmatprep.mubr.f32.mxu0 %v2969_v56  ;;  %2010 = vmatprep.subr.mxu0 %v661_v57  ;;  %v1407_v57 = vld [vmem:[#allocation8 + $0x128] sm:$0xff] }
  0xb1   : > { %2194 = vmatprep.subr.mxu1 %v677_v59  ;;  %2172 = vmatprep.mubr.f32.mxu1 %v2979_v61 }
  0xb2   : > { %1947 = vmatmul.mubr.f32.gmra.mxu0 %v2969_v56  ;;  %2173 = vmatmul.mubr.f32.gmra.mxu1 %v2982_v63 }
  0xb3   : > { %2011 = vmatpush3.xpose.msra.mxu0 %v645_v60  ;;  %2195 = vmatpush3.xpose.msra.mxu1 %v677_v59  ;;  %v1406_v59 = vld [vmem:[#allocation8 + $0x120] sm:$0xff]  ;;  %v1404_v60 = vld [vmem:[#allocation8 + $0x110] sm:$0xff] }
  0xb4   : > { %1948 = vmatprep.mubr.f32.mxu0 %v2972_v58  ;;  %2012 = vmatprep.subr.mxu0 %v660_v62  ;;  %v1403_v62 = vld [vmem:[#allocation8 + $0x108] sm:$0xff] }
  0xb5   : > { %2196 = vmatprep.subr.mxu1 %v676_v0  ;;  %2175 = vmatprep.mubr.f32.mxu1 %v2989_v2 }
  0xb6   : > { %1949 = vmatmul.mubr.f32.gmra.mxu0 %v2972_v58  ;;  %2176 = vmatmul.mubr.f32.gmra.mxu1 %v2992_v4 }
  0xb7   : > { %2013 = vmatpush3.xpose.msra.mxu0 %v644_v1  ;;  %2197 = vmatpush3.xpose.msra.mxu1 %v676_v0  ;;  %v1402_v0 = vld [vmem:[#allocation8 + $0x100] sm:$0xff]  ;;  %v1400_v1 = vld [vmem:[#allocation8 + $0xf0] sm:$0xff] }
  0xb8   : > { %1950 = vmatprep.mubr.f32.mxu0 %v2979_v61  ;;  %2014 = vmatprep.subr.mxu0 %v659_v3  ;;  %v1399_v3 = vld [vmem:[#allocation8 + $0xe8] sm:$0xff] }
  0xb9   : > { %2198 = vmatprep.subr.mxu1 %v675_v5  ;;  %2178 = vmatprep.mubr.f32.mxu1 %v2999_v7 }
  0xba   : > { %1951 = vmatmul.mubr.f32.gmra.mxu0 %v2979_v61  ;;  %2179 = vmatmul.mubr.f32.gmra.mxu1 %v3002_v9 }
  0xbb   : > { %2015 = vmatpush3.xpose.msra.mxu0 %v643_v6  ;;  %2199 = vmatpush3.xpose.msra.mxu1 %v675_v5  ;;  %v1395_v5 = vld [vmem:[#allocation8 + $0xc8] sm:$0xff]  ;;  %v1396_v6 = vld [vmem:[#allocation8 + $0xd0] sm:$0xff] }
  0xbc   : > { %1952 = vmatprep.mubr.f32.mxu0 %v2982_v63  ;;  %2016 = vmatprep.subr.mxu0 %v658_v8  ;;  %v1392_v8 = vld [vmem:[#allocation8 + $0xb0] sm:$0xff] }
  0xbd   : > { %2200 = vmatprep.subr.mxu1 %v674_v10  ;;  %2181 = vmatprep.mubr.f32.mxu1 %v3009_v12 }
  0xbe   : > { %1953 = vmatmul.mubr.f32.gmra.mxu0 %v2982_v63  ;;  %2182 = vmatmul.mubr.f32.gmra.mxu1 %v3012_v14 }
  0xbf   : > { %2017 = vmatpush3.xpose.msra.mxu0 %v642_v11  ;;  %2201 = vmatpush3.xpose.msra.mxu1 %v674_v10  ;;  %v1391_v10 = vld [vmem:[#allocation8 + $0xa8] sm:$0xff]  ;;  %v1389_v11 = vld [vmem:[#allocation8 + $0x98] sm:$0xff] }
  0xc0   : > { %1954 = vmatprep.mubr.f32.mxu0 %v2989_v2  ;;  %2018 = vmatprep.subr.mxu0 %v657_v13  ;;  %v1388_v13 = vld [vmem:[#allocation8 + $0x90] sm:$0xff] }
  0xc1   : > { %2202 = vmatprep.subr.mxu1 %v673_v15  ;;  %2184 = vmatprep.mubr.f32.mxu1 %v3022_v19 }
  0xc2   : > { %1955 = vmatmul.mubr.f32.gmra.mxu0 %v2989_v2  ;;  %2185 = vmatmul.mubr.f32.gmra.mxu1 %v3018_v16 }
  0xc3   : > { %2019 = vmatpush3.xpose.msra.mxu0 %v641_v18  ;;  %2203 = vmatpush3.xpose.msra.mxu1 %v673_v15  ;;  %v1387_v15 = vld [vmem:[#allocation8 + $0x88] sm:$0xff] }
  0xc4   : > { %1956 = vmatprep.mubr.f32.mxu0 %v2992_v4  ;;  %2020 = vmatprep.subr.mxu0 %v656_v20  ;;  %v1383_v18 = vld [vmem:[#allocation8 + $0x68] sm:$0xff]  ;;  %v1382_v20 = vld [vmem:[#allocation8 + $0x60] sm:$0xff] }
  0xc5   : > { %2204 = vmatprep.subr.mxu1 %v672_v21  ;;  %2187 = vmatprep.mubr.f32.mxu1 %v3028_v22 }
  0xc6   : > { %1957 = vmatmul.mubr.f32.gmra.mxu0 %v2992_v4  ;;  %2188 = vmatmul.mubr.f32.gmra.mxu1 %v3031_v23 }
  0xc7   : > { %2021 = vmatpush3.xpose.msra.mxu0 %v640_v24  ;;  %2205 = vmatpush3.xpose.msra.mxu1 %v672_v21  ;;  %v1380_v21 = vld [vmem:[#allocation8 + $0x50] sm:$0xff]  ;;  %v1379_v24 = vld [vmem:[#allocation8 + $0x48] sm:$0xff] }
  0xc8   : > { %1958 = vmatprep.mubr.f32.mxu0 %v2999_v7  ;;  %2022 = vmatprep.subr.mxu0 %v655_v25  ;;  %v1378_v25 = vld [vmem:[#allocation8 + $0x40] sm:$0xff] }
  0xc9   : > { %2206 = vmatprep.subr.mxu1 %v671_v26  ;;  %2222 = vmatprep.mubr.f32.mxu1 %v2958_v17 }
  0xca   : > { %1959 = vmatmul.mubr.f32.gmra.mxu0 %v2999_v7 }
  0xcb   : > { %2023 = vmatpush3.xpose.msra.mxu0 %v639_v27  ;;  %2207 = vmatpush3.xpose.msra.mxu1 %v671_v26  ;;  %v1376_v26 = vld [vmem:[#allocation8 + $0x30] sm:$0xff]  ;;  %v1374_v27 = vld [vmem:[#allocation8 + $0x20] sm:$0xff] }
  0xcc   : > { %1960 = vmatprep.mubr.f32.mxu0 %v3002_v9  ;;  %2024 = vmatprep.subr.mxu0 %v654_v28  ;;  %v1375_v28 = vld [vmem:[#allocation8 + $0x28] sm:$0xff] }
  0xcd   : > { %2208 = vmatprep.subr.mxu1 %v670_v29 }
  0xce   : > { %1961 = vmatmul.mubr.f32.gmra.mxu0 %v3002_v9 }
  0xcf   : > { %2025 = vmatpush3.xpose.msra.mxu0 %v638_v30  ;;  %2209 = vmatpush3.xpose.msra.mxu1 %v670_v29  ;;  %v1373_v29 = vld [vmem:[#allocation8 + $0x18] sm:$0xff]  ;;  %v1371_v30 = vld [vmem:[#allocation8 + $0x8] sm:$0xff] }
  0xd0   : > { %1962 = vmatprep.mubr.f32.mxu0 %v3009_v12  ;;  %2026 = vmatprep.subr.mxu0 %v653_v31  ;;  %v1372_v31 = vld [vmem:[#allocation8 + $0x10] sm:$0xff] }
  0xd1   : > { %2210 = vmatprep.subr.mxu1 %v669_v32 }
  0xd2   : > { %1963 = vmatmul.mubr.f32.gmra.mxu0 %v3009_v12 }
  0xd3   : > { %2027 = vmatpush3.xpose.msra.mxu0 %v637_v33  ;;  %2211 = vmatpush3.xpose.msra.mxu1 %v669_v32  ;;  %v1370_v32 = vld [vmem:[#allocation8] sm:$0xff] }
  0xd4   : > { %1964 = vmatprep.mubr.f32.mxu0 %v3012_v14  ;;  %2028 = vmatprep.subr.mxu0 %v652_v34 }
  0xd5   : > { %2212 = vmatprep.subr.mxu1 %v668_v35 }
  0xd6   : > { %1965 = vmatmul.mubr.f32.gmra.mxu0 %v3012_v14 }
  0xd7   : > { %2029 = vmatpush3.xpose.msra.mxu0 %v636_v36  ;;  %2213 = vmatpush3.xpose.msra.mxu1 %v668_v35 }
  0xd8   : > { %1966 = vmatprep.mubr.f32.mxu0 %v3022_v19  ;;  %2030 = vmatprep.subr.mxu0 %v651_v37 }
  0xd9   : > { %2214 = vmatprep.subr.mxu1 %v667_v38 }
  0xda   : > { %1967 = vmatmul.mubr.f32.gmra.mxu0 %v3022_v19 }
  0xdb   : > { %2031 = vmatpush3.xpose.msra.mxu0 %v635_v39  ;;  %2215 = vmatpush3.xpose.msra.mxu1 %v667_v38 }
  0xdc   : > { %1968 = vmatprep.mubr.f32.mxu0 %v3018_v16  ;;  %2032 = vmatprep.subr.mxu0 %v650_v40 }
  0xdd   : > { %2216 = vmatprep.subr.mxu1 %v666_v41 }
  0xde   : > { %1969 = vmatmul.mubr.f32.gmra.mxu0 %v3018_v16 }
  0xdf   : > { %2033 = vmatpush3.xpose.msra.mxu0 %v634_v42  ;;  %2217 = vmatpush3.xpose.msra.mxu1 %v666_v41 }
  0xe0   : > { %1970 = vmatprep.mubr.f32.mxu0 %v3028_v22  ;;  %2034 = vmatprep.subr.mxu0 %v649_v43 }
  0xe1   : > { %2218 = vmatprep.subr.mxu1 %v665_v44 }
  0xe2   : > { %1971 = vmatmul.mubr.f32.gmra.mxu0 %v3028_v22 }
  0xe3   : > { %2035 = vmatpush3.xpose.msra.mxu0 %v633_v45  ;;  %2219 = vmatpush3.xpose.msra.mxu1 %v665_v44 }
  0xe4   : > { %1972 = vmatprep.mubr.f32.mxu0 %v3031_v23  ;;  %2036 = vmatprep.subr.mxu0 %v648_v46 }
  0xe5   : > { %2220 = vmatprep.subr.mxu1 %v664_v47 }
  0xe6   : > { %1973 = vmatmul.mubr.f32.gmra.mxu0 %v3031_v23 }
  0xe7   : > { %2037 = vmatpush3.xpose.msra.mxu0 %v632_v48  ;;  %2221 = vmatpush3.xpose.msra.mxu1 %v664_v47 }
  0xe8   : > { %2038 = vmatprep.mubr.f32.mxu0 %v2958_v17  ;;  %1418 = vmatprep.subr.mxu0 %v1416_v49 }
  0xe9   : > { %2246 = vmatprep.subr.mxu1 %v1417_v50 }
  0xea   : > { %2039 = vmatmul.mubr.f32.vlgmr.msra.gmra.mxu0 %v2958_v17  ;;  %2223 = vmatmul.mubr.f32.vlgmr.msra.gmra.mxu1 %v2963_v51  ;;  %v1413_v17 = vld [vmem:[#allocation8 + $0x158] sm:$0xff] }
  0xeb   : > { %2040 = vmatprep.mubr.f32.mxu0 %v2963_v51  ;;  %2225 = vmatprep.mubr.f32.mxu1 %v2969_v56 }
  0xec   : > { %1419 = vmatpush1.xpose.msra.mxu0 %v1415_v52  ;;  %2247 = vmatpush3.xpose.msra.mxu1 %v1417_v50 }
  0xed   : > { %1420 = vmatprep.subr.mxu0 %v1413_v17 }
  0xee   : > { %2041 = vmatmul.mubr.f32.gmra.mxu0 %v2963_v51  ;;  %2226 = vmatmul.mubr.f32.gmra.mxu1 %v2972_v58  ;;  %v1414_v51 = vld [vmem:[#allocation8 + $0x160] sm:$0xff] }
  0xef   : > { %2042 = vmatprep.mubr.f32.mxu0 %v2969_v56  ;;  %2228 = vmatprep.mubr.f32.mxu1 %v2979_v61 }
  0xf0   : > { %2248 = vmatprep.subr.mxu1 %v1414_v51  ;;  %1421 = vmatpush1.xpose.msra.mxu0 %v1412_v53 }
  0xf1   : > { %2249 = vmatpush3.xpose.msra.mxu1 %v1414_v51  ;;  %1422 = vmatprep.subr.mxu0 %v1410_v54 }
  0xf2   : > { %2043 = vmatmul.mubr.f32.gmra.mxu0 %v2969_v56  ;;  %2229 = vmatmul.mubr.f32.gmra.mxu1 %v2982_v63  ;;  %v1409_v56 = vld [vmem:[#allocation8 + $0x138] sm:$0xff] }
  0xf3   : > { %2044 = vmatprep.mubr.f32.mxu0 %v2972_v58  ;;  %2231 = vmatprep.mubr.f32.mxu1 %v2989_v2 }
  0xf4   : > { %2250 = vmatprep.subr.mxu1 %v1411_v55  ;;  %1423 = vmatpush1.xpose.msra.mxu0 %v1409_v56 }
  0xf5   : > { %2251 = vmatpush3.xpose.msra.mxu1 %v1411_v55  ;;  %1424 = vmatprep.subr.mxu0 %v1407_v57 }
  0xf6   : > { %2045 = vmatmul.mubr.f32.gmra.mxu0 %v2972_v58  ;;  %2232 = vmatmul.mubr.f32.gmra.mxu1 %v2992_v4  ;;  %v1408_v58 = vld [vmem:[#allocation8 + $0x130] sm:$0xff] }
  0xf7   : > { %2046 = vmatprep.mubr.f32.mxu0 %v2979_v61  ;;  %2234 = vmatprep.mubr.f32.mxu1 %v2999_v7 }
  0xf8   : > { %2252 = vmatprep.subr.mxu1 %v1408_v58  ;;  %1425 = vmatpush1.xpose.msra.mxu0 %v1406_v59 }
  0xf9   : > { %2253 = vmatpush3.xpose.msra.mxu1 %v1408_v58  ;;  %1426 = vmatprep.subr.mxu0 %v1404_v60 }
  0xfa   : > { %2047 = vmatmul.mubr.f32.gmra.mxu0 %v2979_v61  ;;  %2235 = vmatmul.mubr.f32.gmra.mxu1 %v3002_v9  ;;  %v1405_v61 = vld [vmem:[#allocation8 + $0x118] sm:$0xff] }
  0xfb   : > { %2048 = vmatprep.mubr.f32.mxu0 %v2982_v63  ;;  %2237 = vmatprep.mubr.f32.mxu1 %v3009_v12 }
  0xfc   : > { %2254 = vmatprep.subr.mxu1 %v1405_v61  ;;  %1427 = vmatpush1.xpose.msra.mxu0 %v1403_v62 }
  0xfd   : > { %2255 = vmatpush3.xpose.msra.mxu1 %v1405_v61 }
  0xfe   : > { %2049 = vmatmul.mubr.f32.gmra.mxu0 %v2982_v63  ;;  %2238 = vmatmul.mubr.f32.gmra.mxu1 %v3012_v14  ;;  %v1401_v63 = vld [vmem:[#allocation8 + $0xf8] sm:$0xff] }
  0xff   : > { %2050 = vmatprep.mubr.f32.mxu0 %v2989_v2  ;;  %2240 = vmatprep.mubr.f32.mxu1 %v3022_v19 }
 0x100   : > { %1428 = vmatprep.subr.mxu0 %v1401_v63  ;;  %2256 = vmatprep.subr.mxu1 %v1402_v0 }
 0x101   : > { %1429 = vmatpush1.xpose.msra.mxu0 %v1400_v1  ;;  %2257 = vmatpush3.xpose.msra.mxu1 %v1402_v0 }
 0x102   : > { %2051 = vmatmul.mubr.f32.gmra.mxu0 %v2989_v2  ;;  %2241 = vmatmul.mubr.f32.gmra.mxu1 %v3018_v16  ;;  %v1398_v2 = vld [vmem:[#allocation8 + $0xe0] sm:$0xff] }
 0x103   : > { %2052 = vmatprep.mubr.f32.mxu0 %v2992_v4  ;;  %2243 = vmatprep.mubr.f32.mxu1 %v3028_v22 }
 0x104   : > { %1430 = vmatprep.subr.mxu0 %v1398_v2  ;;  %2258 = vmatprep.subr.mxu1 %v1399_v3 }
 0x105   : > { %2259 = vmatpush3.xpose.msra.mxu1 %v1399_v3 }
 0x106   : > { %2053 = vmatmul.mubr.f32.gmra.mxu0 %v2992_v4  ;;  %2244 = vmatmul.mubr.f32.gmra.mxu1 %v3031_v23  ;;  %v1397_v4 = vld [vmem:[#allocation8 + $0xd8] sm:$0xff] }
 0x107   : > { %2054 = vmatprep.mubr.f32.mxu0 %v2999_v7  ;;  %1431 = vmatpush1.xpose.msra.mxu0 %v1397_v4 }
 0x108   : > { %1432 = vmatprep.subr.mxu0 %v1395_v5  ;;  %2260 = vmatprep.subr.mxu1 %v1396_v6 }
 0x109   : > { %2261 = vmatpush3.xpose.msra.mxu1 %v1396_v6 }
 0x10a   : > { %2055 = vmatmul.mubr.f32.gmra.mxu0 %v2999_v7  ;;  %v1394_v7 = vld [vmem:[#allocation8 + $0xc0] sm:$0xff] }
 0x10b   : > { %2056 = vmatprep.mubr.f32.mxu0 %v3002_v9  ;;  %1433 = vmatpush1.xpose.msra.mxu0 %v1394_v7 }
 0x10c   : > { %1434 = vmatprep.subr.mxu0 %v1392_v8 }
 0x10e   : > { %2057 = vmatmul.mubr.f32.gmra.mxu0 %v3002_v9  ;;  %v1393_v9 = vld [vmem:[#allocation8 + $0xb8] sm:$0xff] }
 0x10f   : > { %2058 = vmatprep.mubr.f32.mxu0 %v3009_v12  ;;  %2262 = vmatprep.subr.mxu1 %v1393_v9 }
 0x110   : > { %1435 = vmatpush1.xpose.msra.mxu0 %v1391_v10  ;;  %2263 = vmatpush3.xpose.msra.mxu1 %v1393_v9 }
 0x111   : > { %1436 = vmatprep.subr.mxu0 %v1389_v11 }
 0x112   : > { %2059 = vmatmul.mubr.f32.gmra.mxu0 %v3009_v12  ;;  %v1390_v12 = vld [vmem:[#allocation8 + $0xa0] sm:$0xff] }
 0x113   : > { %2060 = vmatprep.mubr.f32.mxu0 %v3012_v14  ;;  %2264 = vmatprep.subr.mxu1 %v1390_v12 }
 0x114   : > { %2265 = vmatpush3.xpose.msra.mxu1 %v1390_v12  ;;  %1437 = vmatpush1.xpose.msra.mxu0 %v1388_v13 }
 0x115   : > { %2266 = vmatprep.subr.mxu1 %v1387_v15 }
 0x116   : > { %2061 = vmatmul.mubr.f32.gmra.mxu0 %v3012_v14  ;;  %v1386_v14 = vld [vmem:[#allocation8 + $0x80] sm:$0xff] }
 0x117   : > { %2062 = vmatprep.mubr.f32.mxu0 %v3022_v19  ;;  %1438 = vmatprep.subr.mxu0 %v1386_v14 }
 0x118   : > { %2267 = vmatpush3.xpose.msra.mxu1 %v1387_v15 }
 0x11a   : > { %2063 = vmatmul.mubr.f32.gmra.mxu0 %v3022_v19  ;;  %v1384_v19 = vld [vmem:[#allocation8 + $0x70] sm:$0xff] }
 0x11b   : > { %2064 = vmatprep.mubr.f32.mxu0 %v3018_v16  ;;  %2268 = vmatprep.subr.mxu1 %v1384_v19 }
 0x11c   : > { %2269 = vmatpush3.xpose.msra.mxu1 %v1384_v19 }
 0x11e   : > { %2065 = vmatmul.mubr.f32.gmra.mxu0 %v3018_v16  ;;  %v1385_v16 = vld [vmem:[#allocation8 + $0x78] sm:$0xff] }
 0x11f   : > { %2066 = vmatprep.mubr.f32.mxu0 %v3028_v22  ;;  %1439 = vmatpush1.xpose.msra.mxu0 %v1385_v16 }
 0x120   : > { %1440 = vmatprep.subr.mxu0 %v1383_v18 }
 0x122   : > { %2067 = vmatmul.mubr.f32.gmra.mxu0 %v3028_v22  ;;  %v1381_v22 = vld [vmem:[#allocation8 + $0x58] sm:$0xff] }
 0x123   : > { %2068 = vmatprep.mubr.f32.mxu0 %v3031_v23  ;;  %1441 = vmatpush1.xpose.msra.mxu0 %v1382_v20 }
 0x124   : > { %1442 = vmatprep.subr.mxu0 %v1380_v21  ;;  %2270 = vmatprep.subr.mxu1 %v1381_v22 }
 0x125   : > { %2271 = vmatpush3.xpose.msra.mxu1 %v1381_v22 }
 0x126   : > { %2069 = vmatmul.mubr.f32.gmra.mxu0 %v3031_v23  ;;  %v1377_v23 = vld [vmem:[#allocation8 + $0x38] sm:$0xff]  ;;  %2272 = vmatprep.subr.mxu1 %v1378_v25 }
 0x127   : > { %1443 = vmatpush1.xpose.msra.mxu0 %v1379_v24 }
 0x128   : > { %1444 = vmatprep.subr.mxu0 %v1377_v23 }
 0x129   : > { %2273 = vmatpush3.xpose.msra.mxu1 %v1378_v25 }
 0x12a   : > { %2274 = vmatprep.subr.mxu1 %v1375_v28 }
 0x12b   : > { %1445 = vmatpush1.xpose.msra.mxu0 %v1376_v26 }
 0x12c   : > { %1446 = vmatprep.subr.mxu0 %v1374_v27 }
 0x12d   : > { %2275 = vmatpush3.xpose.msra.mxu1 %v1375_v28 }
 0x12e   : > { %2276 = vmatprep.subr.mxu1 %v1372_v31 }
 0x12f   : > { %1447 = vmatpush1.xpose.msra.mxu0 %v1373_v29 }
 0x130   : > { %1448 = vmatprep.subr.mxu0 %v1371_v30 }
 0x131   : > { %2277 = vmatpush3.xpose.msra.mxu1 %v1372_v31 }
 0x133   : > { %1449 = vmatpush1.xpose.msra.mxu0 %v1370_v32 }
 0x16a   : > { %v3101_v33 = vpop.f32.mrf.mxu0  ;;  %v3103_v34 = vpop.f32.mrf.mxu1 }
 0x16b   : > { %v1855_v35 = vmul.f32 -1.442695, %v3101_v33  ;;  %v1860_v36 = vmul.f32 -1.442695, %v3103_v34 }
 0x16c   : > { %v3107_v37 = vpop.f32.mrf.mxu0  ;;  %v3109_v38 = vpop.f32.mrf.mxu1 }
 0x16d   : > { %2385 = vpow2.f32 %v1855_v35  ;;  %v1856_v41 = vmul.f32 -1.442695, %v3107_v37  ;;  %v1857_v44 = vmul.f32 -1.442695, %v3109_v38 }
 0x16e   : > { %v3111_v39 = vpop.f32.mrf.mxu0  ;;  %v3113_v40 = vpop.f32.mrf.mxu1  ;;  %2387 = vpow2.f32 %v1860_v36 }
 0x16f   : > { %2389 = vpow2.f32 %v1856_v41  ;;  %v1858_v47 = vmul.f32 -1.442695, %v3111_v39  ;;  %v1866_v52 = vmul.f32 -1.442695, %v3113_v40 }
 0x170   : > { %v3116_v42 = vpop.f32.mrf.mxu0  ;;  %v3118_v43 = vpop.f32.mrf.mxu1  ;;  %2391 = vpow2.f32 %v1857_v44 }
 0x171   : > { %v1859_v48 = vmul.f32 -1.442695, %v3116_v42  ;;  %v1863_v51 = vmul.f32 -1.442695, %v3118_v43  ;;  %2393 = vpow2.f32 %v1858_v47 }
 0x172   : > { %v3121_v45 = vpop.f32.mrf.mxu0  ;;  %v3123_v46 = vpop.f32.mrf.mxu1 }
 0x173   : > { %v1861_v53 = vmul.f32 -1.442695, %v3121_v45  ;;  %2395 = vpow2.f32 %v1859_v48  ;;  %v1872_v56 = vmul.f32 -1.442695, %v3123_v46 }
 0x174   : > { %v3127_v49 = vpop.f32.mrf.mxu0  ;;  %v3129_v50 = vpop.f32.mrf.mxu1  ;;  %2397 = vpow2.f32 %v1866_v52 }
 0x175   : > { %v1862_v57 = vmul.f32 -1.442695, %v3127_v49  ;;  %2399 = vpow2.f32 %v1863_v51  ;;  %v1869_v59 = vmul.f32 -1.442695, %v3129_v50 }
 0x176   : > { %v3132_v17 = vpop.f32.mrf.mxu0  ;;  %v3136_v54 = vpop.f32.mrf.mxu1  ;;  %2401 = vpow2.f32 %v1861_v53 }
 0x177   : > { %v1864_v60 = vmul.f32 -1.442695, %v3132_v17  ;;  %2403 = vpow2.f32 %v1872_v56  ;;  %v1878_v2 = vmul.f32 -1.442695, %v3136_v54 }
 0x178   : > { %v3138_v55 = vpop.f32.mrf.mxu0  ;;  %v3146_v61 = vpop.f32.mrf.mxu1  ;;  %2405 = vpow2.f32 %v1862_v57 }
 0x179   : > { %v1865_v63 = vmul.f32 -1.442695, %v3138_v55  ;;  %2407 = vpow2.f32 %v1869_v59  ;;  %v1875_v4 = vmul.f32 -1.442695, %v3146_v61 }
 0x17a   : > { %v3142_v58 = vpop.f32.mrf.mxu0  ;;  %v2386_v62 = vpop.eup %2385  ;;  %2409 = vpow2.f32 %v1864_v60 }
 0x17b   : > { %v2388_v1 = vpop.eup %2387  ;;  %v1130_v5 = vadd.f32 1.0, %v2386_v62  ;;  %2411 = vpow2.f32 %v1865_v63  ;;  %v1867_v9 = vmul.f32 -1.442695, %v3142_v58  ;;  %v3177_v48 = vpop.f32.mrf.mxu1 }
 0x17c   : > { %v3149_v0 = vpop.f32.mrf.mxu0  ;;  %v2390_v6 = vpop.eup %2389  ;;  %v1135_v7 = vadd.f32 1.0, %v2388_v1  ;;  %2413 = vpow2.f32 %v1878_v2  ;;  %3491 = vst [vmem:[#allocation22_spill] sm:$0xff] %v3177_v48 }
 0x17d   : > { %v2392_v10 = vpop.eup %2391  ;;  %v1868_v11 = vmul.f32 -1.442695, %v3149_v0  ;;  %2415 = vpow2.f32 %v1875_v4  ;;  %v1131_v13 = vadd.f32 1.0, %v2390_v6  ;;  %v3189_v2 = vpop.f32.mrf.mxu1 }
 0x17e   : > { %v3152_v3 = vpop.f32.mrf.mxu0  ;;  %2417 = vrcp.f32 %v1130_v5  ;;  %v2394_v14 = vpop.eup %2393  ;;  %v1132_v19 = vadd.f32 1.0, %v2392_v10  ;;  %3494 = vst [vmem:[#allocation25_spill] sm:$0xff] %v3189_v2 }
 0x17f   : > { %3484 = vst [vmem:[#allocation15_spill] sm:$0xff] %v3152_v3  ;;  %2419 = vrcp.f32 %v1135_v7  ;;  %v1870_v15 = vmul.f32 -1.442695, %v3152_v3  ;;  %v1133_v23 = vadd.f32 1.0, %v2394_v14 }
 0x180   : > { %v3155_v8 = vpop.f32.mrf.mxu0  ;;  %v2396_v18 = vpop.eup %2395  ;;  %2421 = vpow2.f32 %v1867_v9 }
 0x181   : > { %v2398_v20 = vpop.eup %2397  ;;  %2423 = vpow2.f32 %v1868_v11  ;;  %v1871_v21 = vmul.f32 -1.442695, %v3155_v8  ;;  %v1134_v26 = vadd.f32 1.0, %v2396_v18  ;;  %v3201_v18 = vpop.f32.mrf.mxu1 }
 0x182   : > { %v3159_v12 = vpop.f32.mrf.mxu0  ;;  %v2400_v24 = vpop.eup %2399  ;;  %2425 = vrcp.f32 %v1131_v13  ;;  %v1141_v5 = vadd.f32 1.0, %v2398_v20  ;;  %3497 = vst [vmem:[#allocation28_spill] sm:$0xff] %v3201_v18 }
 0x183   : > { %3485 = vst [vmem:[#allocation16_spill] sm:$0xff] %v3159_v12  ;;  %v2402_v25 = vpop.eup %2401  ;;  %2427 = vpow2.f32 %v1870_v15  ;;  %v1873_v29 = vmul.f32 -1.442695, %v3159_v12  ;;  %v1138_v11 = vadd.f32 1.0, %v2400_v24 }
 0x184   : > { %v3162_v16 = vpop.f32.mrf.mxu0  ;;  %v2404_v28 = vpop.eup %2403  ;;  %2429 = vrcp.f32 %v1132_v19  ;;  %v1136_v51 = vadd.f32 1.0, %v2402_v25 }
 0x185   : > { %3486 = vst [vmem:[#allocation17_spill] sm:$0xff] %v3162_v16  ;;  %v2406_v30 = vpop.eup %2405  ;;  %2431 = vpow2.f32 %v1871_v21  ;;  %v1874_v31 = vmul.f32 -1.442695, %v3162_v16  ;;  %v1147_v24 = vadd.f32 1.0, %v2404_v28 }
 0x186   : > { %v3165_v22 = vpop.f32.mrf.mxu0  ;;  %v2408_v35 = vpop.eup %2407  ;;  %2433 = vrcp.f32 %v1133_v23  ;;  %v1137_v56 = vadd.f32 1.0, %v2406_v30 }
 0x187   : > { %3487 = vst [vmem:[#allocation18_spill] sm:$0xff] %v3165_v22  ;;  %v1876_v36 = vmul.f32 -1.442695, %v3165_v22  ;;  %v2410_v41 = vpop.eup %2409  ;;  %2435 = vrcp.f32 %v1134_v26  ;;  %v1144_v28 = vadd.f32 1.0, %v2408_v35 }
 0x188   : > { %v3167_v27 = vpop.f32.mrf.mxu0  ;;  %v2412_v52 = vpop.eup %2411  ;;  %2437 = vpow2.f32 %v1873_v29  ;;  %v1139_v60 = vadd.f32 1.0, %v2410_v41 }
 0x189   : > { %3488 = vst [vmem:[#allocation19_spill] sm:$0xff] %v3167_v27  ;;  %v1877_v44 = vmul.f32 -1.442695, %v3167_v27  ;;  %v3179_v53 = vpop.eup %2413  ;;  %2439 = vpow2.f32 %v1874_v31  ;;  %v1140_v63 = vadd.f32 1.0, %v2412_v52 }
 0x18a   : > { %v3171_v32 = vpop.f32.mrf.mxu0  ;;  %v3183_v59 = vpop.eup %2415  ;;  %2441 = vpow2.f32 %v1876_v36 }
 0x18b   : > { %3489 = vst [vmem:[#allocation20_spill] sm:$0xff] %v3171_v32  ;;  %v3185_v62 = vpop.eup %2417  ;;  %2443 = vpow2.f32 %v1877_v44  ;;  %v1879_v7 = vmul.f32 -1.442695, %v3171_v32  ;;  %v3211_v36 = vpop.f32.mrf.mxu1 }
 0x18c   : > { %v3175_v47 = vpop.f32.mrf.mxu0  ;;  %v3191_v4 = vpop.eup %2419  ;;  %2445 = vrcp.f32 %v1136_v51  ;;  %3498 = vst [vmem:[#allocation29_spill] sm:$0xff] %v3211_v36 }
 0x18d   : > { %3490 = vst [vmem:[#allocation21_spill] sm:$0xff] %v3175_v47  ;;  %v2422_v6 = vpop.eup %2421  ;;  %2447 = vrcp.f32 %v1137_v56  ;;  %v1880_v14 = vmul.f32 -1.442695, %v3175_v47 }
 0x18e   : > { %v3181_v57 = vpop.f32.mrf.mxu0  ;;  %v2424_v10 = vpop.eup %2423  ;;  %2449 = vrcp.f32 %v1139_v60  ;;  %v1142_v20 = vadd.f32 1.0, %v2422_v6 }
 0x18f   : > { %3492 = vst [vmem:[#allocation23_spill] sm:$0xff] %v3181_v57  ;;  %v3196_v13 = vpop.eup %2425  ;;  %2451 = vrcp.f32 %v1140_v63  ;;  %v1143_v23 = vadd.f32 1.0, %v2424_v10  ;;  %v1882_v44 = vmul.f32 -1.442695, %v3181_v57 }
 0x190   : > { %v3187_v1 = vpop.f32.mrf.mxu0  ;;  %v2428_v19 = vpop.eup %2427  ;;  %2453 = vrcp.f32 %v1141_v5 }
 0x191   : > { %3493 = vst [vmem:[#allocation24_spill] sm:$0xff] %v3187_v1  ;;  %v3203_v21 = vpop.eup %2429  ;;  %2455 = vpow2.f32 %v1879_v7  ;;  %v1145_v30 = vadd.f32 1.0, %v2428_v19  ;;  %v1883_v5 = vmul.f32 -1.442695, %v3187_v1  ;;  %v3221_v7 = vpop.f32.mrf.mxu1  ;;  %v1881_v1 = vmul.f32 -1.442695, %v3189_v2 }
 0x192   : > { %v3194_v9 = vpop.f32.mrf.mxu0  ;;  %v2432_v26 = vpop.eup %2431  ;;  %2457 = vrcp.f32 %v1138_v11  ;;  %3499 = vst [vmem:[#allocation30_spill] sm:$0xff] %v3221_v7 }
 0x193   : > { %3495 = vst [vmem:[#allocation26_spill] sm:$0xff] %v3194_v9  ;;  %v3207_v29 = vpop.eup %2433  ;;  %2459 = vpow2.f32 %v1880_v14  ;;  %v1146_v51 = vadd.f32 1.0, %v2432_v26  ;;  %v1885_v22 = vmul.f32 -1.442695, %v3194_v9 }
 0x194   : > { %v3199_v15 = vpop.f32.mrf.mxu0  ;;  %v3213_v41 = vpop.eup %2435  ;;  %2461 = vrcp.f32 %v1142_v20 }
 0x195   : > { %3496 = vst [vmem:[#allocation27_spill] sm:$0xff] %v3199_v15  ;;  %v2438_v52 = vpop.eup %2437  ;;  %2463 = vrcp.f32 %v1143_v23 }
 0x196   : > { %v3205_v25 = vpop.f32.mrf.mxu0  ;;  %v2440_v60 = vpop.eup %2439  ;;  %2465 = vrcp.f32 %v1147_v24  ;;  %v1148_v11 = vadd.f32 1.0, %v2438_v52 }
 0x197   : > { %v2442_v63 = vpop.eup %2441  ;;  %2467 = vrcp.f32 %v1145_v30  ;;  %v1149_v19 = vadd.f32 1.0, %v2440_v60  ;;  %v3231_v30 = vpop.f32.mrf.mxu1  ;;  %v1153_v60 = vadd.f32 1.0, %v3179_v53  ;;  %v1890_v53 = vmul.f32 -1.442695, %v3201_v18 }
 0x198   : > { %v3209_v31 = vpop.f32.mrf.mxu0  ;;  %v2444_v10 = vpop.eup %2443  ;;  %2469 = vpow2.f32 %v1882_v44  ;;  %v1151_v35 = vadd.f32 1.0, %v2442_v63  ;;  %v1884_v44 = vmul.f32 -1.442695, %v3177_v48  ;;  %v1886_v18 = vmul.f32 -1.442695, %v3199_v15 }
 0x199   : > { %v3223_v14 = vpop.eup %2445  ;;  %2471 = vrcp.f32 %v1146_v51  ;;  %v1152_v24 = vadd.f32 1.0, %v2444_v10  ;;  %v3245_v32 = vpop.f32.mrf.mxu1  ;;  %v1888_v15 = vmul.f32 -1.442695, %v3205_v25 }
 0x19a   : > { %v3216_v56 = vpop.f32.mrf.mxu0  ;;  %v3227_v23 = vpop.eup %2447  ;;  %2473 = vrcp.f32 %v1144_v28 }
 0x19b   : > { %v3229_v26 = vpop.eup %2449  ;;  %2475 = vpow2.f32 %v1883_v5  ;;  %v1150_v5 = vadd.f32 1.0, %v3183_v59  ;;  %v3259_v2 = vpop.f32.mrf.mxu1 }
 0x19c   : > { %v3219_v6 = vpop.f32.mrf.mxu0  ;;  %v3235_v52 = vpop.eup %2451  ;;  %2477 = vrcp.f32 %v1148_v11 }
 0x19d   : > { %v3238_v51 = vpop.eup %2453  ;;  %2479 = vrcp.f32 %v1149_v19 }
 0x19e   : > { %v3225_v20 = vpop.f32.mrf.mxu0  ;;  %v2456_v28 = vpop.eup %2455  ;;  %2481 = vrcp.f32 %v1151_v35 }
 0x19f   : > { %v2458_v10 = vpop.eup %2457  ;;  %2483 = vrcp.f32 %v1152_v24  ;;  %v1154_v24 = vadd.f32 1.0, %v2456_v28 }
 0x1a0   : > { %v3233_v57 = vpop.f32.mrf.mxu0  ;;  %v2460_v47 = vpop.eup %2459  ;;  %2485 = vpow2.f32 %v1884_v44 }
 0x1a1   : > { %v3250_v19 = vpop.eup %2461  ;;  %2487 = vrcp.f32 %v1153_v60  ;;  %v1155_v27 = vadd.f32 1.0, %v2460_v47  ;;  %v1887_v60 = vmul.f32 -1.442695, %v3211_v36  ;;  %v1275_v47 = vmul.f32 %v3196_v13, %v3107_v37 }
 0x1a2   : > { %v3241_v63 = vpop.f32.mrf.mxu0  ;;  %v3255_v59 = vpop.eup %2463  ;;  %2489 = vrcp.f32 %v1150_v5  ;;  %v1274_v36 = vmul.f32 %v3185_v62, %v3101_v33 }
 0x1a3   : > { %v3257_v48 = vpop.eup %2465  ;;  %2491 = vpow2.f32 %v1881_v1  ;;  %v1276_v1 = vmul.f32 %v3203_v21, %v3109_v38 }
 0x1a4   : > { %v3247_v11 = vpop.f32.mrf.mxu0  ;;  %v3263_v44 = vpop.eup %2467  ;;  %2493 = vpow2.f32 %v1885_v22 }
 0x1a5   : > { %3500 = vst [vmem:[#allocation31_spill] sm:$0xff] %v3247_v11  ;;  %3503 = vst [vmem:[#allocation34_spill] sm:$0xff] %v3263_v44  ;;  %v2470_v9 = vpop.eup %2469  ;;  %2495 = vpow2.f32 %v1890_v53  ;;  %v1279_v53 = vmul.f32 %v3191_v4, %v3103_v34  ;;  %v1282_v4 = vmul.f32 %v2458_v10, %v3118_v43  ;;  %v1891_v43 = vmul.f32 -1.442695, %v3216_v56 }
 0x1a6   : > { %v3253_v35 = vpop.f32.mrf.mxu0  ;;  %v3267_v5 = vpop.eup %2471  ;;  %2497 = vrcp.f32 %v1154_v24  ;;  %v1157_v37 = vadd.f32 1.0, %v2470_v9  ;;  %v1893_v24 = vmul.f32 -1.442695, %v3231_v30  ;;  %v1889_v9 = vmul.f32 -1.442695, %v3209_v31 }
 0x1a7   : > { %3501 = vst [vmem:[#allocation32_spill] sm:$0xff] %v3253_v35  ;;  %v2474_v22 = vpop.eup %2473  ;;  %2499 = vrcp.f32 %v1155_v27  ;;  %v1278_v27 = vmul.f32 %v3213_v41, %v3116_v42 }
 0x1a8   : > { %v3261_v12 = vpop.f32.mrf.mxu0  ;;  %v2476_v44 = vpop.eup %2475  ;;  %2501 = vpow2.f32 %v1887_v60 }
 0x1a9   : > { %3502 = vst [vmem:[#allocation33_spill] sm:$0xff] %v3261_v12  ;;  %v1896_v12 = vmul.f32 -1.442695, %v3221_v7  ;;  %v3279_v21 = vpop.eup %2477  ;;  %2503 = vpow2.f32 %v1886_v18  ;;  %v1285_v18 = vmul.f32 %v3238_v51, %v3113_v40 }
 0x1aa   : > { %v746_v16 = vpop.f32.mrf.mxu0  ;;  %v2224_v28 = vpop.f32.mrf.mxu1 }
 0x1ab   : > { %v1322_v7 = vmul.f32 %v1274_v36, %v746_v16  ;;  %v1327_v33 = vmul.f32 %v2224_v28, %v1279_v53  ;;  %v3282_v34 = vpop.eup %2479  ;;  %2505 = vpow2.f32 %v1896_v12  ;;  %v1277_v16 = vmul.f32 %v3207_v29, %v3111_v39 }
 0x1ac   : > { %v748_v35 = vpop.f32.mrf.mxu0  ;;  %v907_v11 = vpop.f32.mrf.mxu1  ;;  %v1158_v36 = vadd.f32 1.0, %v2476_v44  ;;  %2507 = vpow2.f32 %v1888_v15  ;;  %v1892_v28 = vmul.f32 -1.442695, %v3219_v6  ;;  %v1288_v44 = vmul.f32 %v2474_v22, %v3129_v50 }
 0x1ad   : > { %v1323_v13 = vmul.f32 %v1275_v47, %v748_v35  ;;  %v1324_v38 = vmul.f32 %v1276_v1, %v907_v11  ;;  %v3288_v11 = vpop.eup %2481  ;;  %2509 = vrcp.f32 %v1157_v37  ;;  %v1280_v53 = vmul.f32 %v3223_v14, %v3121_v45 }
 0x1ae   : > { %v752_v62 = vpop.f32.mrf.mxu0  ;;  %v2227_v3 = vpop.f32.mrf.mxu1  ;;  %2511 = vpow2.f32 %v1893_v24  ;;  %v1291_v37 = vmul.f32 %v3257_v48, %v3123_v46  ;;  %v1895_v50 = vmul.f32 -1.442695, %v3233_v57 }
 0x1af   : > { %1482 = vmatprep.mubr.f32.mxu0 %v1323_v13  ;;  %2278 = vmatprep.mubr.f32.mxu1 %v1324_v38  ;;  %v3294_v42 = vpop.eup %2483  ;;  %v1325_v39 = vmul.f32 %v1277_v16, %v752_v62  ;;  %v1333_v29 = vmul.f32 %v2227_v3, %v1285_v18  ;;  %2513 = vpow2.f32 %v1889_v9  ;;  %v1894_v3 = vmul.f32 -1.442695, %v3225_v20 }
 0x1b0   : > { %v754_v35 = vpop.f32.mrf.mxu0  ;;  %v917_v60 = vpop.f32.mrf.mxu1  ;;  %1483 = vmatmul.mubr.f32.vlgmr.msra.gmra.mxu0 %v1322_v7  ;;  %2279 = vmatmul.mubr.f32.vlgmr.msra.gmra.mxu1 %v1327_v33  ;;  %v1281_v7 = vmul.f32 %v3227_v23, %v3127_v49  ;;  %2515 = vrcp.f32 %v1158_v36  ;;  %v1902_v9 = vmul.f32 -1.442695, %v3245_v32  ;;  %v1283_v18 = vmul.f32 %v3229_v26, %v3132_v17 }
 0x1b1   : > { %v1326_v12 = vmul.f32 %v1278_v27, %v754_v35  ;;  %v1330_v41 = vmul.f32 %v1282_v4, %v917_v60  ;;  %v2486_v10 = vpop.eup %2485  ;;  %2517 = vpow2.f32 %v1891_v43  ;;  %v1284_v27 = vmul.f32 %v3235_v52, %v3138_v55 }
 0x1b2   : > { %v758_v40 = vpop.f32.mrf.mxu0  ;;  %v2230_v51 = vpop.f32.mrf.mxu1  ;;  %v1159_v47 = vadd.f32 1.0, %v2486_v10 }
 0x1b3   : > { %v2488_v15 = vpop.eup %2487  ;;  %1487 = vmatprep.mubr.f32.mxu0 %v1326_v12  ;;  %2281 = vmatprep.mubr.f32.mxu1 %v1330_v41  ;;  %2519 = vpow2.f32 %v1892_v28  ;;  %v1328_v45 = vmul.f32 %v1280_v53, %v758_v40  ;;  %v1339_v14 = vmul.f32 %v2230_v51, %v1291_v37 }
 0x1b4   : > { %v2490_v1 = vpop.eup %2489  ;;  %v760_v13 = vpop.f32.mrf.mxu0  ;;  %1488 = vmatmul.mubr.f32.gmra.mxu0 %v1325_v39  ;;  %2282 = vmatmul.mubr.f32.gmra.mxu1 %v1333_v29  ;;  %2521 = vrcp.f32 %v1159_v47  ;;  %v1297_v36 = vmul.f32 %v2488_v15, %v3136_v54  ;;  %v1287_v54 = vmul.f32 %v3255_v59, %v3149_v0  ;;  %v1897_v29 = vmul.f32 -1.442695, %v3241_v63 }
 0x1b5   : > { %v927_v38 = vpop.f32.mrf.mxu1  ;;  %v2492_v49 = vpop.eup %2491  ;;  %v1329_v23 = vmul.f32 %v1281_v7, %v760_v13  ;;  %v1294_v4 = vmul.f32 %v2490_v1, %v3146_v61  ;;  %v1286_v15 = vmul.f32 %v3250_v19, %v3142_v58  ;;  %v1899_v0 = vmul.f32 -1.442695, %v3259_v2 }
 0x1b6   : > { %v1336_v22 = vmul.f32 %v1288_v44, %v927_v38  ;;  %v2494_v24 = vpop.eup %2493  ;;  %v1156_v33 = vadd.f32 1.0, %v2492_v49  ;;  %v764_v62 = vpop.f32.mrf.mxu0  ;;  %v1290_v13 = vmul.f32 %v3267_v5, %v3155_v8  ;;  %v3504_v49 = vld [vmem:[#allocation15_spill] sm:$0xff] }
 0x1b7   : > { %v2233_v46 = vpop.f32.mrf.mxu1  ;;  %v2496_v48 = vpop.eup %2495  ;;  %1492 = vmatprep.mubr.f32.mxu0 %v1329_v23  ;;  %v1160_v41 = vadd.f32 1.0, %v2494_v24  ;;  %v1331_v10 = vmul.f32 %v1283_v18, %v764_v62  ;;  %v3506_v24 = vld [vmem:[#allocation31_spill] sm:$0xff]  ;;  %v3507_v62 = vld [vmem:[#allocation32_spill] sm:$0xff] }
 0x1b8   : > { %2284 = vmatprep.mubr.f32.mxu1 %v1336_v22  ;;  %v3311_v16 = vpop.eup %2497  ;;  %2523 = vrcp.f32 %v1156_v33  ;;  %v1165_v35 = vadd.f32 1.0, %v2496_v48  ;;  %v766_v60 = vpop.f32.mrf.mxu0  ;;  %1493 = vmatmul.mubr.f32.gmra.mxu0 %v1328_v45  ;;  %v1345_v28 = vmul.f32 %v2233_v46, %v1297_v36  ;;  %v1898_v33 = vmul.f32 -1.442695, %v3506_v24  ;;  %v3508_v48 = vld [vmem:[#allocation33_spill] sm:$0xff] }
 0x1b9   : > { %v937_v43 = vpop.f32.mrf.mxu1  ;;  %2285 = vmatmul.mubr.f32.gmra.mxu1 %v1339_v14  ;;  %v3316_v55 = vpop.eup %2499  ;;  %2525 = vpow2.f32 %v1894_v3  ;;  %v1332_v61 = vmul.f32 %v1284_v27, %v766_v60  ;;  %v1900_v46 = vmul.f32 -1.442695, %v3507_v62  ;;  %v1901_v27 = vmul.f32 -1.442695, %v3508_v48  ;;  %v3509_v36 = vld [vmem:[#allocation17_spill] sm:$0xff] }
 0x1ba   : > { %v1342_v52 = vmul.f32 %v1294_v4, %v937_v43  ;;  %v2502_v12 = vpop.eup %2501  ;;  %2527 = vpow2.f32 %v1895_v50  ;;  %v770_v39 = vpop.f32.mrf.mxu0  ;;  %v3505_v50 = vld [vmem:[#allocation34_spill] sm:$0xff] }
 0x1bb   : > { %v2504_v17 = vpop.eup %2503  ;;  %v1162_v26 = vadd.f32 1.0, %v2502_v12  ;;  %2529 = vpow2.f32 %v1902_v9  ;;  %v3321_v40 = vpop.f32.mrf.mxu1  ;;  %1497 = vmatprep.mubr.f32.mxu0 %v1332_v61  ;;  %v1334_v53 = vmul.f32 %v1286_v15, %v770_v39  ;;  %v1289_v23 = vmul.f32 %v3505_v50, %v3504_v49  ;;  %v3512_v15 = vld [vmem:[#allocation19_spill] sm:$0xff] }
 0x1bc   : > { %2287 = vmatprep.mubr.f32.mxu1 %v1342_v52  ;;  %v2506_v51 = vpop.eup %2505  ;;  %2531 = vrcp.f32 %v1165_v35  ;;  %v772_v7 = vpop.f32.mrf.mxu0  ;;  %1498 = vmatmul.mubr.f32.gmra.mxu0 %v1331_v10  ;;  %v1161_v58 = vadd.f32 1.0, %v2504_v17  ;;  %v1293_v35 = vmul.f32 %v3282_v34, %v3509_v36  ;;  %v3510_v52 = vld [vmem:[#allocation16_spill] sm:$0xff] }
 0x1bd   : > { %2288 = vmatmul.mubr.f32.gmra.mxu1 %v1345_v28  ;;  %v2508_v44 = vpop.eup %2507  ;;  %2533 = vrcp.f32 %v1162_v26  ;;  %v1171_v47 = vadd.f32 1.0, %v2506_v51  ;;  %v1335_v59 = vmul.f32 %v1287_v54, %v772_v7  ;;  %v947_v19 = vpop.f32.mrf.mxu1  ;;  %v1292_v12 = vmul.f32 %v3279_v21, %v3510_v52  ;;  %v3511_v54 = vld [vmem:[#allocation25_spill] sm:$0xff] }
 0x1be   : > { %v3326_v1 = vpop.eup %2509  ;;  %2535 = vrcp.f32 %v1160_v41  ;;  %v776_v37 = vpop.f32.mrf.mxu0  ;;  %v1163_v41 = vadd.f32 1.0, %v2508_v44  ;;  %v1296_v7 = vmul.f32 %v3294_v42, %v3512_v15 }
 0x1bf   : > { %v2512_v3 = vpop.eup %2511  ;;  %2537 = vpow2.f32 %v1897_v29  ;;  %1502 = vmatprep.mubr.f32.mxu0 %v1335_v59  ;;  %v1337_v4 = vmul.f32 %v1289_v23, %v776_v37  ;;  %v2239_v43 = vpop.f32.mrf.mxu1 }
 0x1c0   : > { %v2514_v38 = vpop.eup %2513  ;;  %2539 = vrcp.f32 %v1171_v47  ;;  %v1168_v22 = vadd.f32 1.0, %v2512_v3  ;;  %v778_v45 = vpop.f32.mrf.mxu0  ;;  %1503 = vmatmul.mubr.f32.gmra.mxu0 %v1334_v53  ;;  %v3513_v47 = vld [vmem:[#allocation22_spill] sm:$0xff] }
 0x1c1   : > { %v3333_v14 = vpop.eup %2515  ;;  %2541 = vpow2.f32 %v1899_v0  ;;  %v1338_v8 = vmul.f32 %v1290_v13, %v778_v45  ;;  %v1164_v60 = vadd.f32 1.0, %v2514_v38  ;;  %v957_v44 = vpop.f32.mrf.mxu1  ;;  %v3514_v53 = vld [vmem:[#allocation18_spill] sm:$0xff] }
 0x1c2   : > { %v2518_v5 = vpop.eup %2517  ;;  %2543 = vrcp.f32 %v1168_v22  ;;  %v782_v9 = vpop.f32.mrf.mxu0  ;;  %v1295_v37 = vmul.f32 %v3288_v11, %v3514_v53 }
 0x1c3   : > { %v2520_v18 = vpop.eup %2519  ;;  %2545 = vrcp.f32 %v1161_v58  ;;  %1507 = vmatprep.mubr.f32.mxu0 %v1338_v8  ;;  %v1340_v34 = vmul.f32 %v1292_v12, %v782_v9  ;;  %v1166_v3 = vadd.f32 1.0, %v2518_v5  ;;  %v3517_v9 = vld [vmem:[#allocation20_spill] sm:$0xff] }
 0x1c4   : > { %v2522_v61 = vpop.eup %2521  ;;  %2547 = vpow2.f32 %v1898_v33  ;;  %v784_v10 = vpop.f32.mrf.mxu0  ;;  %1508 = vmatmul.mubr.f32.gmra.mxu0 %v1337_v4  ;;  %v1167_v21 = vadd.f32 1.0, %v2520_v18  ;;  %v3518_v18 = vld [vmem:[#allocation28_spill] sm:$0xff] }
 0x1c5   : > { %v2524_v28 = vpop.eup %2523  ;;  %2549 = vpow2.f32 %v1900_v46  ;;  %v1341_v39 = vmul.f32 %v1293_v35, %v784_v10  ;;  %v1303_v0 = vmul.f32 %v2522_v61, %v3513_v47  ;;  %v3515_v46 = vld [vmem:[#allocation21_spill] sm:$0xff] }
 0x1c6   : > { %v2526_v17 = vpop.eup %2525  ;;  %v1300_v26 = vmul.f32 %v2524_v28, %v3511_v54  ;;  %2551 = vpow2.f32 %v1901_v27  ;;  %v788_v29 = vpop.f32.mrf.mxu0  ;;  %v1299_v8 = vmul.f32 %v3316_v55, %v3515_v46  ;;  %v3516_v27 = vld [vmem:[#allocation29_spill] sm:$0xff] }
 0x1c7   : > { %v2528_v51 = vpop.eup %2527  ;;  %2553 = vrcp.f32 %v1164_v60  ;;  %1512 = vmatprep.mubr.f32.mxu0 %v1341_v39  ;;  %v1351_v49 = vmul.f32 %v3321_v40, %v1303_v0  ;;  %v1169_v23 = vadd.f32 1.0, %v2526_v17  ;;  %v1343_v22 = vmul.f32 %v1295_v37, %v788_v29  ;;  %v3519_v17 = vld [vmem:[#allocation24_spill] sm:$0xff]  ;;  %v3521_v0 = vld [vmem:[#allocation30_spill] sm:$0xff] }
 0x1c8   : > { %v2530_v59 = vpop.eup %2529  ;;  %2555 = vrcp.f32 %v1163_v41  ;;  %v1348_v13 = vmul.f32 %v1300_v26, %v947_v19  ;;  %v790_v58 = vpop.f32.mrf.mxu0  ;;  %1513 = vmatmul.mubr.f32.gmra.mxu0 %v1340_v34  ;;  %v1170_v5 = vadd.f32 1.0, %v2528_v51  ;;  %v1298_v40 = vmul.f32 %v3311_v16, %v3517_v9  ;;  %v3520_v51 = vld [vmem:[#allocation23_spill] sm:$0xff] }
 0x1c9   : > { %v2532_v38 = vpop.eup %2531  ;;  %v1344_v50 = vmul.f32 %v1296_v7, %v790_v58  ;;  %2557 = vrcp.f32 %v1167_v21  ;;  %v2242_v19 = vpop.f32.mrf.mxu1  ;;  %v1177_v35 = vadd.f32 1.0, %v2530_v59  ;;  %v1302_v54 = vmul.f32 %v3333_v14, %v3519_v17  ;;  %v3522_v58 = vld [vmem:[#allocation27_spill] sm:$0xff] }
 0x1ca   : > { %v2534_v42 = vpop.eup %2533  ;;  %2290 = vmatprep.mubr.f32.mxu1 %v1348_v13  ;;  %v794_v33 = vpop.f32.mrf.mxu0  ;;  %v1309_v36 = vmul.f32 %v2532_v38, %v3518_v18  ;;  %2559 = vrcp.f32 %v1166_v3  ;;  %v1301_v15 = vmul.f32 %v3326_v1, %v3520_v51 }
 0x1cb   : > { %v2536_v45 = vpop.eup %2535  ;;  %v1306_v11 = vmul.f32 %v2534_v42, %v3516_v27  ;;  %2291 = vmatmul.mubr.f32.gmra.mxu1 %v1351_v49  ;;  %1517 = vmatprep.mubr.f32.mxu0 %v1344_v50  ;;  %2561 = vrcp.f32 %v1169_v23  ;;  %v1346_v10 = vmul.f32 %v1298_v40, %v794_v33  ;;  %v967_v34 = vpop.f32.mrf.mxu1  ;;  %v3523_v49 = vld [vmem:[#allocation26_spill] sm:$0xff] }
 0x1cc   : > { %v2538_v4 = vpop.eup %2537  ;;  %v796_v60 = vpop.f32.mrf.mxu0  ;;  %1518 = vmatmul.mubr.f32.gmra.mxu0 %v1343_v22  ;;  %v1357_v41 = vmul.f32 %v2239_v43, %v1309_v36  ;;  %2563 = vrcp.f32 %v1170_v5  ;;  %v1304_v50 = vmul.f32 %v2536_v45, %v3523_v49 }
 0x1cd   : > { %v2540_v61 = vpop.eup %2539  ;;  %v1354_v52 = vmul.f32 %v1306_v11, %v957_v44  ;;  %v1347_v55 = vmul.f32 %v1299_v8, %v796_v60  ;;  %v1172_v16 = vadd.f32 1.0, %v2538_v4  ;;  %2565 = vrcp.f32 %v1177_v35  ;;  %v2245_v40 = vpop.f32.mrf.mxu1 }
 0x1ce   : > { %v2542_v12 = vpop.eup %2541  ;;  %v800_v28 = vpop.f32.mrf.mxu0  ;;  %v1315_v21 = vmul.f32 %v2540_v61, %v3521_v0 }
 0x1cf   : > { %v2544_v39 = vpop.eup %2543  ;;  %v1174_v26 = vadd.f32 1.0, %v2542_v12  ;;  %2293 = vmatprep.mubr.f32.mxu1 %v1354_v52  ;;  %1522 = vmatprep.mubr.f32.mxu0 %v1347_v55  ;;  %v1349_v37 = vmul.f32 %v1301_v15, %v800_v28 }
 0x1d0   : > { %v2546_v29 = vpop.eup %2545  ;;  %v1312_v7 = vmul.f32 %v2544_v39, %v3231_v30  ;;  %2294 = vmatmul.mubr.f32.gmra.mxu1 %v1357_v41  ;;  %v802_v43 = vpop.f32.mrf.mxu0  ;;  %1523 = vmatmul.mubr.f32.gmra.mxu0 %v1346_v10  ;;  %v1363_v1 = vmul.f32 %v2242_v19, %v1315_v21 }
 0x1d1   : > { %v2548_v47 = vpop.eup %2547  ;;  %2567 = vrcp.f32 %v1174_v26  ;;  %v1350_v14 = vmul.f32 %v1302_v54, %v802_v43  ;;  %v1305_v38 = vmul.f32 %v2546_v29, %v3522_v58  ;;  %v977_v41 = vpop.f32.mrf.mxu1 }
 0x1d2   : > { %v2550_v44 = vpop.eup %2549  ;;  %v1173_v59 = vadd.f32 1.0, %v2548_v47  ;;  %v1360_v53 = vmul.f32 %v1312_v7, %v967_v34  ;;  %v806_v3 = vpop.f32.mrf.mxu0  ;;  %2569 = vrcp.f32 %v1172_v16 }
 0x1d3   : > { %v2552_v13 = vpop.eup %2551  ;;  %1527 = vmatprep.mubr.f32.mxu0 %v1350_v14  ;;  %v1175_v42 = vadd.f32 1.0, %v2550_v44  ;;  %v1352_v8 = vmul.f32 %v1304_v50, %v806_v3 }
 0x1d4   : > { %v2554_v30 = vpop.eup %2553  ;;  %2571 = vrcp.f32 %v1173_v59  ;;  %v1176_v23 = vadd.f32 1.0, %v2552_v13  ;;  %2296 = vmatprep.mubr.f32.mxu1 %v1360_v53  ;;  %v808_v22 = vpop.f32.mrf.mxu0  ;;  %1528 = vmatmul.mubr.f32.gmra.mxu0 %v1349_v37 }
 0x1d5   : > { %v2556_v33 = vpop.eup %2555  ;;  %2297 = vmatmul.mubr.f32.gmra.mxu1 %v1363_v1  ;;  %v1353_v46 = vmul.f32 %v1305_v38, %v808_v22  ;;  %v1308_v11 = vmul.f32 %v2554_v30, %v3209_v31 }
 0x1d6   : > { %v812_v27 = vpop.f32.mrf.mxu0  ;;  %2573 = vrcp.f32 %v1176_v23  ;;  %v2558_v5 = vpop.eup %2557  ;;  %v1307_v19 = vmul.f32 %v2556_v33, %v3205_v25 }
 0x1d7   : > { %1532 = vmatprep.mubr.f32.mxu0 %v1353_v46  ;;  %2575 = vrcp.f32 %v1175_v42  ;;  %v2560_v4 = vpop.eup %2559  ;;  %v1311_v60 = vmul.f32 %v2558_v5, %v3219_v6 }
 0x1d8   : > { %v814_v45 = vpop.f32.mrf.mxu0  ;;  %1533 = vmatmul.mubr.f32.gmra.mxu0 %v1352_v8  ;;  %v1355_v18 = vmul.f32 %v1307_v19, %v812_v27  ;;  %v2562_v35 = vpop.eup %2561  ;;  %v1310_v31 = vmul.f32 %v2560_v4, %v3216_v56 }
 0x1d9   : > { %v1356_v9 = vmul.f32 %v1308_v11, %v814_v45  ;;  %v2564_v61 = vpop.eup %2563  ;;  %v1313_v6 = vmul.f32 %v2562_v35, %v3225_v20 }
 0x1da   : > { %v818_v36 = vpop.f32.mrf.mxu0  ;;  %v2566_v55 = vpop.eup %2565  ;;  %v1314_v39 = vmul.f32 %v2564_v61, %v3233_v57 }
 0x1db   : > { %1537 = vmatprep.mubr.f32.mxu0 %v1356_v9  ;;  %v1358_v10 = vmul.f32 %v1310_v31, %v818_v36  ;;  %v1321_v16 = vmul.f32 %v2566_v55, %v3245_v32 }
 0x1dc   : > { %v820_v52 = vpop.f32.mrf.mxu0  ;;  %1538 = vmatmul.mubr.f32.gmra.mxu0 %v1355_v18 }
 0x1dd   : > { %v1359_v12 = vmul.f32 %v1311_v60, %v820_v52  ;;  %v1369_v51 = vmul.f32 %v2245_v40, %v1321_v16 }
 0x1de   : > { %v2568_v25 = vpop.eup %2567  ;;  %v824_v28 = vpop.f32.mrf.mxu0 }
 0x1df   : > { %v1318_v17 = vmul.f32 %v2568_v25, %v3259_v2  ;;  %1542 = vmatprep.mubr.f32.mxu0 %v1359_v12  ;;  %v2570_v54 = vpop.eup %2569  ;;  %v1361_v15 = vmul.f32 %v1313_v6, %v824_v28 }
 0x1e0   : > { %v826_v26 = vpop.f32.mrf.mxu0  ;;  %1543 = vmatmul.mubr.f32.gmra.mxu0 %v1358_v10  ;;  %v1316_v2 = vmul.f32 %v2570_v54, %v3241_v63 }
 0x1e1   : > { %v2572_v56 = vpop.eup %2571  ;;  %v1366_v34 = vmul.f32 %v1318_v17, %v977_v41  ;;  %v1362_v29 = vmul.f32 %v1314_v39, %v826_v26 }
 0x1e2   : > { %v830_v7 = vpop.f32.mrf.mxu0  ;;  %v1317_v43 = vmul.f32 %v2572_v56, %v3506_v24 }
 0x1e3   : > { %2299 = vmatprep.mubr.f32.mxu1 %v1366_v34  ;;  %1547 = vmatprep.mubr.f32.mxu0 %v1362_v29  ;;  %v2574_v57 = vpop.eup %2573  ;;  %v1364_v0 = vmul.f32 %v1316_v2, %v830_v7 }
 0x1e4   : > { %2300 = vmatmul.mubr.f32.gmra.mxu1 %v1369_v51  ;;  %v832_v47 = vpop.f32.mrf.mxu0  ;;  %1548 = vmatmul.mubr.f32.gmra.mxu0 %v1361_v15  ;;  %v2576_v20 = vpop.eup %2575  ;;  %v1320_v14 = vmul.f32 %v2574_v57, %v3508_v48 }
 0x1e5   : > { %v1365_v32 = vmul.f32 %v1317_v43, %v832_v47  ;;  %v1319_v44 = vmul.f32 %v2576_v20, %v3507_v62 }
 0x1e6   : > { %v836_v21 = vpop.f32.mrf.mxu0 }
 0x1e7   : > { %1552 = vmatprep.mubr.f32.mxu0 %v1365_v32  ;;  %v1367_v53 = vmul.f32 %v1319_v44, %v836_v21 }
 0x1e8   : > { %v838_v59 = vpop.f32.mrf.mxu0  ;;  %1553 = vmatmul.mubr.f32.gmra.mxu0 %v1364_v0 }
 0x1e9   : > { %v1368_v24 = vmul.f32 %v1320_v14, %v838_v59 }
 0x1eb   : > { %1557 = vmatprep.mubr.f32.mxu0 %v1368_v24 }
 0x1ec   : > { %1558 = vmatmul.mubr.f32.gmra.mxu0 %v1367_v53 }
 0x270   : > { %v1484_v63 = vpop.f32.mrf.mxu0  ;;  %v2280_v37 = vpop.f32.mrf.mxu1 }
 0x272   : > { %v1486_v3 = vpop.f32.mrf.mxu0  ;;  %v1629_v13 = vpop.f32.mrf.mxu1 }
 0x273   : > { %v1630_v58 = vadd.f32 %v1629_v13, %v1484_v63 }
 0x274   : > { %v1489_v38 = vpop.f32.mrf.mxu0  ;;  %v2283_v1 = vpop.f32.mrf.mxu1 }
 0x275   : > { %1708 = vst [vmem:[%s3376_s21] sm:$0xff] %v1630_v58  ;;  %v1635_v62 = vadd.f32 %v2280_v37, %v1489_v38 }
 0x276   : > { %v1491_v48 = vpop.f32.mrf.mxu0  ;;  %v1639_v30 = vpop.f32.mrf.mxu1 }
 0x277   : > { %1709 = vst [vmem:[%s3376_s21 + $0x8] sm:$0xff] %v1635_v62 }
 0x278   : > { %v1494_v49 = vpop.f32.mrf.mxu0 }
 0x279   : > { %v1640_v50 = vadd.f32 %v1639_v30, %v1494_v49  ;;  %v2286_v23 = vpop.f32.mrf.mxu1 }
 0x27a   : > { %v1496_v42 = vpop.f32.mrf.mxu0 }
 0x27b   : > { %1710 = vst [vmem:[%s3376_s21 + $0x10] sm:$0xff] %v1640_v50  ;;  %v1649_v8 = vpop.f32.mrf.mxu1 }
 0x27c   : > { %v1499_v22 = vpop.f32.mrf.mxu0 }
 0x27d   : > { %v1645_v33 = vadd.f32 %v2283_v1, %v1499_v22  ;;  %v2289_v19 = vpop.f32.mrf.mxu1 }
 0x27e   : > { %v1501_v46 = vpop.f32.mrf.mxu0 }
 0x27f   : > { %1711 = vst [vmem:[%s3376_s21 + $0x18] sm:$0xff] %v1645_v33  ;;  %v1659_v40 = vpop.f32.mrf.mxu1 }
 0x280   : > { %v1504_v27 = vpop.f32.mrf.mxu0 }
 0x281   : > { %v1650_v11 = vadd.f32 %v1649_v8, %v1504_v27 }
 0x282   : > { %v1506_v5 = vpop.f32.mrf.mxu0 }
 0x283   : > { %1712 = vst [vmem:[%s3376_s21 + $0x20] sm:$0xff] %v1650_v11 }
 0x284   : > { %v1509_v45 = vpop.f32.mrf.mxu0 }
 0x285   : > { %v1655_v4 = vadd.f32 %v2286_v23, %v1509_v45 }
 0x286   : > { %v1511_v9 = vpop.f32.mrf.mxu0 }
 0x287   : > { %1713 = vst [vmem:[%s3376_s21 + $0x28] sm:$0xff] %v1655_v4 }
 0x288   : > { %v1514_v18 = vpop.f32.mrf.mxu0 }
 0x289   : > { %v1660_v36 = vadd.f32 %v1659_v40, %v1514_v18 }
 0x28a   : > { %v1516_v35 = vpop.f32.mrf.mxu0 }
 0x28b   : > { %1714 = vst [vmem:[%s3376_s21 + $0x30] sm:$0xff] %v1660_v36  ;;  %v2292_v60 = vpop.f32.mrf.mxu1 }
 0x28c   : > { %v1519_v61 = vpop.f32.mrf.mxu0 }
 0x28d   : > { %v1665_v31 = vadd.f32 %v2289_v19, %v1519_v61  ;;  %v1669_v55 = vpop.f32.mrf.mxu1 }
 0x28e   : > { %v1521_v52 = vpop.f32.mrf.mxu0 }
 0x28f   : > { %1715 = vst [vmem:[%s3376_s21 + $0x38] sm:$0xff] %v1665_v31 }
 0x290   : > { %v1524_v12 = vpop.f32.mrf.mxu0  ;;  %v2295_v10 = vpop.f32.mrf.mxu1 }
 0x291   : > { %v1670_v25 = vadd.f32 %v1669_v55, %v1524_v12 }
 0x292   : > { %v1526_v41 = vpop.f32.mrf.mxu0  ;;  %v1679_v54 = vpop.f32.mrf.mxu1 }
 0x293   : > { %1716 = vst [vmem:[%s3376_s21 + $0x40] sm:$0xff] %v1670_v25 }
 0x294   : > { %v1529_v28 = vpop.f32.mrf.mxu0 }
 0x295   : > { %v1675_v39 = vadd.f32 %v2292_v60, %v1529_v28  ;;  %v2298_v56 = vpop.f32.mrf.mxu1 }
 0x296   : > { %v1531_v17 = vpop.f32.mrf.mxu0 }
 0x297   : > { %1717 = vst [vmem:[%s3376_s21 + $0x48] sm:$0xff] %v1675_v39  ;;  %v1689_v15 = vpop.f32.mrf.mxu1 }
 0x298   : > { %v1534_v6 = vpop.f32.mrf.mxu0 }
 0x299   : > { %v1680_v16 = vadd.f32 %v1679_v54, %v1534_v6 }
 0x29a   : > { %v1536_v26 = vpop.f32.mrf.mxu0 }
 0x29b   : > { %1718 = vst [vmem:[%s3376_s21 + $0x50] sm:$0xff] %v1680_v16 }
 0x29c   : > { %v1539_v34 = vpop.f32.mrf.mxu0 }
 0x29d   : > { %v1685_v29 = vadd.f32 %v2295_v10, %v1539_v34 }
 0x29e   : > { %v1541_v51 = vpop.f32.mrf.mxu0 }
 0x29f   : > { %1719 = vst [vmem:[%s3376_s21 + $0x58] sm:$0xff] %v1685_v29 }
 0x2a0   : > { %v1544_v7 = vpop.f32.mrf.mxu0 }
 0x2a1   : > { %v1690_v43 = vadd.f32 %v1689_v15, %v1544_v7 }
 0x2a2   : > { %v1546_v57 = vpop.f32.mrf.mxu0 }
 0x2a3   : > { %1720 = vst [vmem:[%s3376_s21 + $0x60] sm:$0xff] %v1690_v43 }
 0x2a4   : > { %v2301_v2 = vpop.f32.mrf.mxu1  ;;  %v1549_v47 = vpop.f32.mrf.mxu0 }
 0x2a5   : > { %v1695_v20 = vadd.f32 %v2298_v56, %v1549_v47 }
 0x2a6   : > { %v1551_v32 = vpop.f32.mrf.mxu0  ;;  %v1699_v0 = vpop.f32.mrf.mxu1 }
 0x2a7   : > { %1721 = vst [vmem:[%s3376_s21 + $0x68] sm:$0xff] %v1695_v20 }
 0x2a8   : > { %v1554_v21 = vpop.f32.mrf.mxu0 }
 0x2a9   : > { %v1700_v14 = vadd.f32 %v1699_v0, %v1554_v21 }
 0x2aa   : > { %v1556_v44 = vpop.f32.mrf.mxu0 }
 0x2ab   : > { %1722 = vst [vmem:[%s3376_s21 + $0x70] sm:$0xff] %v1700_v14 }
 0x2ac   : > { %v1559_v59 = vpop.f32.mrf.mxu0 }
 0x2ad   : > { %v1705_v24 = vadd.f32 %v2301_v2, %v1559_v59 }
 0x2ae   : > { %v1561_v53 = vpop.f32.mrf.mxu0 }
 0x2af   : > { %1723 = vst [vmem:[%s3376_s21 + $0x78] sm:$0xff] %v1705_v24 }
 0x2b0   : > { %2696 = shalt.err (!%p2693_p10)
}
 0x2b1   : > { %s2697_s11 = scalar_lea.hbm %s3398_s14, 2048  ;;  %s2701_s29 = scalar_lea.hbm %s3448_s4, 4096 }
 0x2b2   : > { %p2698_p6 = scmp.ne.s32.totalorder %s3398_s14, %s2697_s11  ;;  %p2702_p3 = scmp.lt.s32.totalorder %s3398_s14, %s3448_s4 }
 0x2b3   : > { %p2703_p11 = scmp.lt.s32.totalorder %s2701_s29, %s2697_s11 }
 0x2b4   : > { %p2699_p4 = pnand %p2698_p6, %p3524_p1 }
 0x2b5   : > { %p2704_p5 = por %p2703_p11, %p2702_p3 }
 0x2b6   : > { %p2700_p8 = pneg %p2699_p4 }
 0x2b8   : > { %p2705_p7 = pnand %p2704_p5, %p2700_p8 }
 0x2ba   : > { %2708 = shalt.err (!%p2705_p7)
}
 0x2bb   : > { %s2766_s21 = smov 128   ;;  %s2767_s23 = smov 8  }
 0x2bc   : > { %2316 = dma.vmem_to_hbm [thread:$0]  (%p3524_p1), %s3400_s6, 2048, %s3398_s14, %s1725_s24, %s2766_s21, %s2766_s21, %s2767_s23  }
 0x2bd PF: > { %s1753_s7 = sand.u32 1, %s2743_s15   ;;  %p3525_p12 = scmp.ne.s32.totalorder %s3473_s22, 0 }
 0x2be   : > { %p3526_p9 = scmp.ge.s32.totalorder %s2755_s18, 2  ;;  %s1754_s12 = scalar_lea.sflag [#allocation4], %s1753_s7 }
 0x2c0   : > { %p2333_p13 = pnand %p3526_p9, %p3525_p12 }
 0x2c2   : > { %p2334_p0 = pneg %p2333_p13 }
 0x2c4   : > { %2738 = dma.done.wait (%p2334_p0), %s1754_s12, 2048  }
 0x2c5   : > { %2740 = vsyncadd (%p2334_p0), %s1754_s12, 4294965248  ;;  %p19_p2 = scmp.ge.s32.totalorder %s2879_s27, 4   ;;  %s3527_s15 = smov %s2747_s16 }
 0x2c6   : > { %s3528_s16 = smov %s2751_s17  ;;  %s3529_s17 = smov %s2889_s5 }
 0x2c7   : > { %s3530_s18 = smov %s2879_s27  ;;  %21 = sbr.rel (!%p19_p2) target bundleno = 7 (0x7), region = 93 }
 0x2cc   :  { %1759 = vsyncpa [#allocation3], 1 }
 0x2cd   :  { %1761 = vsyncpa [#allocation3 + $0x1], 1 }
 0x2ce   :  { %1762 = vsyncpa [#allocation6], 1 }
 0x2cf   :  { %1763 = vsyncpa [#allocation9], 1 }
 0x2d0   :  { %1764 = vsyncpa [#allocation4], 1 }
 0x2d1   :  { %1766 = vsyncpa [#allocation4 + $0x1], 1 }

</bundles_post_ra>
